<compile_context>
chip_gen: v7x
topology: tpu7x:2x2x1
jax: 0.10.0
libtpu: 0.0.40
codegen_flags: <defaults>
</compile_context>

<pallas_src>
import jax
import jax.numpy as jnp
from jax.experimental import pallas as pl
from jax.experimental.pallas import tpu as pltpu

KERNEL_SIZES = (3, 4, 5)
NUM_CHANNELS = (100, 100, 100)
EMBED_SIZE = 100
NUM_CLASSES = 2
GROUPS = tuple((tag, k) for tag in ("u", "f") for k in KERNEL_SIZES)  # PyTorch concat order

E_PAD = 128                      # embedding dim padded to the lane width
C_PAD = 128                      # per-conv output channels padded to the lane width
CP = C_PAD * len(GROUPS)         # 768 fused conv channels (6 x 128)
N_PAD = 128                      # lane-dense FC output block (real classes live in [:2])
K_MAX = max(KERNEL_SIZES)        # 5 taps (shorter kernels zero-padded in the tap dim)
K_LHS = K_MAX * E_PAD            # 640 = fused MXU contraction depth
HALO = 16                        # chunk halo: >= K_MAX-1 and a multiple of 16 (bf16 sublanes)
NEG = -1e30                      # finite "-inf" for the additive position mask


def _cdiv(a, b):
    return -(-a // b)


def _round_up(x, m):
    return _cdiv(x, m) * m


def _vmem_limit_bytes():
    """Generation-aware VMEM limit: ~3/4 of physical, clamped to a safe range."""
    try:
        cap = int(pltpu.get_tpu_info().vmem_capacity_bytes)
    except Exception:
        cap = 64 << 20                                   # conservative (v7x-sized) fallback
    return max(32 << 20, min((cap * 3) // 4, 112 << 20))


def _plan_tiles(B, L, vmem_limit, max_chunk_len=None):
    """Pick (batch tile TB, padded batch Bp, chunk length Lch, #chunks)."""
    Bp8 = _round_up(B, 8)
    # Per-step working-set budget; keep headroom for the resident weights (~2.5 MiB),
    # the output tile and compiler scratch.
    budget = max(4 << 20, int(vmem_limit * 0.55) - (4 << 20))
    # Bytes per (batch row, chunk position):
    #   bf16 emb chunk (double-buffered input) + bf16 lane-concat LHS + f32 acc (+1 temp).
    row_pos_bytes = E_PAD * 2 * 2 + K_LHS * 2 + 2 * CP * 4
    lch_cap = 512 if max_chunk_len is None else max(16, _round_up(min(max_chunk_len, 512), 16))
    Lch = min(_round_up(max(L, 1), 16), lch_cap)
    while True:
        per_row = (Lch + HALO) * row_pos_bytes + CP * 4          # + pooled scratch row
        tb_cap = (budget // per_row) // 8 * 8
        if tb_cap >= 8 or Lch <= 32:
            break
        Lch = max(32, (Lch // 2) // 16 * 16)                     # shrink chunk and retry
    n_chunks = _cdiv(L, Lch)
    TB = int(min(max(tb_cap, 8), Bp8, 256))
    # Keep >=2 batch grid steps when B allows it, so v7x's two TensorCores both get work.
    if Bp8 > 8 and TB >= Bp8:
        TB = max(8, _round_up(_cdiv(Bp8, 2), 8))
    Bp = _round_up(Bp8, TB)
    return TB, Bp, Lch, n_chunks


# ---------------------------------------------------------------------------
# Parameter packing (PyTorch layouts -> fused, lane-aligned kernel operands)
# ---------------------------------------------------------------------------
def pack_params(params, seq_len):
    E = EMBED_SIZE
    # Embedding table pre-padded to the lane width and pre-cast to bf16: the gather in the
    # wrapper then directly produces the kernel-ready activation layout.
    emb_tab = jnp.pad(params["embedding"], ((0, 0), (0, E_PAD - E))).astype(jnp.bfloat16)

    w_cat = jnp.zeros((K_MAX, E_PAD, CP), jnp.float32)           # [tap, E_pad, 6*128]
    b_cat = jnp.zeros((1, CP), jnp.float32)
    thr = jnp.zeros((1, CP), jnp.int32)                          # last valid conv position
    fcw = jnp.zeros((CP, N_PAD), jnp.float32)
    fcb = jnp.zeros((1, N_PAD), jnp.float32)

    ch_of_k = dict(zip(KERNEL_SIZES, NUM_CHANNELS))
    col = 0
    for g, (tag, k) in enumerate(GROUPS):
        C = ch_of_k[k]
        w = params[f"w_{tag}{k}"]                                # [C, E, k] (Conv1d layout)
        w_t = jnp.transpose(w, (2, 1, 0))                        # [k, E, C]
        lo = g * C_PAD
        w_cat = w_cat.at[:k, :E, lo:lo + C].set(w_t)
        b_cat = b_cat.at[0, lo:lo + C].set(params[f"b_{tag}{k}"])
        thr = thr.at[0, lo:lo + C_PAD].set(seq_len - k)
        fcw = fcw.at[lo:lo + C, :NUM_CLASSES].set(params["fc_w"][:, col:col + C].T)
        col += C
    fcb = fcb.at[0, :NUM_CLASSES].set(params["fc_b"])

    # Fused MXU weight slab: LHS column t*128+e multiplies w[c, e, t].
    w_flat = w_cat.reshape(K_LHS, CP).astype(jnp.bfloat16)
    return emb_tab, w_flat, b_cat, thr, fcw.astype(jnp.bfloat16), fcb


# ---------------------------------------------------------------------------
# Pallas kernel: grid = (batch tiles, length chunks)
# ---------------------------------------------------------------------------
def _make_kernel(n_chunks: int, lch: int):
    chunk = lch + HALO

    def kernel(emb_ref, w_ref, b_ref, thr_ref, fcw_ref, fcb_ref, out_ref, pool_ref):
        j = pl.program_id(1)                                     # length-chunk index

        @pl.when(j == 0)
        def _init():
            pool_ref[...] = jnp.full(pool_ref.shape, NEG, pool_ref.dtype)

        tb = emb_ref.shape[0]
        blk = emb_ref[...]                                       # (TB, Lch+HALO, 128) bf16
        # Single fused conv matmul: lane-concat the 5 tap views (in-block slices, no wrap)
        # into K=640, so one dot replaces 5 K=128 dots + 4 f32 adds.
        lhs = jnp.concatenate([blk[:, t:t + lch, :] for t in range(K_MAX)], axis=-1)
        lhs = lhs.reshape(tb * lch, K_LHS)                       # (TB*Lch, 640) bf16
        acc = jnp.dot(lhs, w_ref[...], preferred_element_type=jnp.float32)
        acc = acc.reshape(tb, lch, CP)                           # (TB, Lch, 768) f32

        # Small additive position mask (Lch x 768): absolute position j*Lch+p must be
        # <= L - k(channel). Avoids a second [TB, Lch, 768]-sized bool/where temp.
        pos = jax.lax.broadcasted_iota(jnp.int32, (lch, CP), 0)
        addmask = jnp.where(pos + j * lch <= thr_ref[...], 0.0, NEG).astype(jnp.float32)
        pooled = jnp.max(acc + addmask[None, :, :], axis=1)      # (TB, 768)
        pool_ref[...] = jnp.maximum(pool_ref[...], pooled)       # running global max-pool

        @pl.when(j == n_chunks - 1)
        def _finalize():
            # Bias + ReLU after the pool: relu(max_p(x) + b) == max_p(relu(x + b)).
            feats = jnp.maximum(pool_ref[...] + b_ref[...], 0.0).astype(jnp.bfloat16)
            # TODO(synk): Dropout(p=0.5) omitted — identity in eval/inference mode.
            out_ref[...] = (jnp.dot(feats, fcw_ref[...], preferred_element_type=jnp.float32)
                            + fcb_ref[...])

    return kernel


# ---------------------------------------------------------------------------
# Wrapper
# ---------------------------------------------------------------------------
def textcnn_forward(x_tokens, params, *, max_chunk_len=None):
    B, L = x_tokens.shape
    assert L >= K_MAX, f"sequence length {L} must be >= max kernel size {K_MAX}"

    emb_tab, w_flat, b_cat, thr, fcw, fcb = pack_params(params, L)

    vmem_limit = _vmem_limit_bytes()
    TB, Bp, Lch, n_chunks = _plan_tiles(B, L, vmem_limit, max_chunk_len)
    chunk = Lch + HALO
    Lfull = n_chunks * Lch + HALO

    # Single gather (frozen/unfrozen tables are identical at construction); the table is
    # already [V, 128] bf16, so this is the kernel-ready layout with no f32 intermediate.
    emb = jnp.take(emb_tab, x_tokens, axis=0)                    # [B, L, 128] bf16
    emb = jnp.pad(emb, ((0, Bp - B), (0, Lfull - L), (0, 0)))    # [Bp, Lfull, 128]

    # Overlapping length chunks (stride Lch, HALO extra rows) so every conv position finds
    # all its taps inside its own block; ~HALO/Lch extra HBM, free reshape when n_chunks==1.
    if n_chunks == 1:
        emb_chunks = emb[:, None, :, :]                          # [Bp, 1, chunk, 128]
    else:
        emb_chunks = jnp.stack(
            [jax.lax.slice_in_dim(emb, j * Lch, j * Lch + chunk, axis=1)
             for j in range(n_chunks)], axis=1)                  # [Bp, n_chunks, chunk, 128]

    out = pl.pallas_call(
        _make_kernel(n_chunks, Lch),
        out_shape=jax.ShapeDtypeStruct((Bp, N_PAD), jnp.float32),
        grid=(Bp // TB, n_chunks),
        in_specs=[
            pl.BlockSpec((TB, None, chunk, E_PAD), lambda i, j: (i, j, 0, 0)),  # emb chunks
            pl.BlockSpec((K_LHS, CP), lambda i, j: (0, 0)),      # fused conv weights (resident)
            pl.BlockSpec((1, CP), lambda i, j: (0, 0)),          # conv bias
            pl.BlockSpec((1, CP), lambda i, j: (0, 0)),          # per-channel position threshold
            pl.BlockSpec((CP, N_PAD), lambda i, j: (0, 0)),      # fc weight (bf16, padded)
            pl.BlockSpec((1, N_PAD), lambda i, j: (0, 0)),       # fc bias (padded)
        ],
        out_specs=pl.BlockSpec((TB, N_PAD), lambda i, j: (i, 0)),
        scratch_shapes=[pltpu.VMEM((TB, CP), jnp.float32)],      # running max-pool
        compiler_params=pltpu.CompilerParams(
            dimension_semantics=("parallel", "arbitrary"),
            vmem_limit_bytes=vmem_limit,
        ),
    )(emb_chunks, w_flat, b_cat, thr, fcw, fcb)
    return out[:B, :NUM_CLASSES]


# ---------------------------------------------------------------------------
# Deterministic parameter init (synthetic GloVe + xavier_uniform like _init_weights)
# ---------------------------------------------------------------------------
def init_params(key, vocab_size, embed_size=EMBED_SIZE,
                kernel_sizes=KERNEL_SIZES, num_channels=NUM_CHANNELS,
                num_classes=NUM_CLASSES, pad_idx=0):
    keys = iter(jax.random.split(key, 32))
    params = {}

    # GloVe substitute: random embedding table, padding row zeroed (padding_idx behaviour).
    emb = 0.1 * jax.random.normal(next(keys), (vocab_size, embed_size), jnp.float32)
    params["embedding"] = emb.at[pad_idx].set(0.0)

    def xavier(k, shape, fan_in, fan_out):
        lim = (6.0 / (fan_in + fan_out)) ** 0.5
        return jax.random.uniform(k, shape, jnp.float32, -lim, lim)

    for tag in ("u", "f"):
        for ksz, C in zip(kernel_sizes, num_channels):
            fan_in, fan_out = embed_size * ksz, C * ksz
            params[f"w_{tag}{ksz}"] = xavier(next(keys), (C, embed_size, ksz), fan_in, fan_out)
            blim = 1.0 / (fan_in ** 0.5)
            params[f"b_{tag}{ksz}"] = jax.random.uniform(next(keys), (C,), jnp.float32,
                                                         -blim, blim)

    fc_in = 2 * sum(num_channels)
    params["fc_w"] = xavier(next(keys), (num_classes, fc_in), fc_in, num_classes)
    blim = 1.0 / (fc_in ** 0.5)
    params["fc_b"] = jax.random.uniform(next(keys), (num_classes,), jnp.float32, -blim, blim)
    return params


# ---------------------------------------------------------------------------
# Pure-JAX reference (f32, mirrors the PyTorch forward)
# ---------------------------------------------------------------------------
def textcnn_reference(x_tokens, params):
    emb = jnp.take(params["embedding"], x_tokens, axis=0)        # [B, L, E]
    B, L, _ = emb.shape
    feats = []
    for tag, k in GROUPS:
        w = params[f"w_{tag}{k}"]                                # [C, E, k]
        b = params[f"b_{tag}{k}"]                                # [C]
        Lout = L - k + 1
        acc = jnp.zeros((B, Lout, w.shape[0]), jnp.float32)
        for t in range(k):
            acc = acc + jnp.einsum("ble,ce->blc", emb[:, t:t + Lout, :], w[:, :, t])
        acc = jnp.maximum(acc + b, 0.0)
        feats.append(jnp.max(acc, axis=1))
    f = jnp.concatenate(feats, axis=-1)                          # [B, 600]
    return f @ params["fc_w"].T + params["fc_b"]


if __name__ == "__main__":
    key = jax.random.PRNGKey(0)
    k_tok, k_tok2, k_par = jax.random.split(key, 3)

    VOCAB = 50
    params = init_params(k_par, VOCAB)
    fwd = jax.jit(textcnn_forward, static_argnames=("max_chunk_len",))

    # Small single-chunk case (B=2, L=8).
    B, L = 2, 8
    x = jax.random.randint(k_tok, (B, L), 0, VOCAB, dtype=jnp.int32)
    out = jax.block_until_ready(fwd(x, params))
    ref = jax.block_until_ready(textcnn_reference(x, params))
    assert out.shape == (B, NUM_CLASSES), out.shape
    # bf16 conv/fc path vs f32 reference -> loosened tolerance.
    assert jnp.allclose(out, ref, atol=3e-2, rtol=3e-2), (out, ref)

    # Multi-chunk / multi-batch-tile case (exercises the "arbitrary" chunk axis, the
    # pl.when init/finalize and the running-max scratch): B=12, L=40, forced Lch=16.
    B2, L2 = 12, 40
    x2 = jax.random.randint(k_tok2, (B2, L2), 0, VOCAB, dtype=jnp.int32)
    out2 = jax.block_until_ready(fwd(x2, params, max_chunk_len=16))
    ref2 = jax.block_until_ready(textcnn_reference(x2, params))
    assert out2.shape == (B2, NUM_CLASSES), out2.shape
    assert jnp.allclose(out2, ref2, atol=3e-2, rtol=3e-2), (out2, ref2)

    print("KERNEL_OK")
</pallas_src>

<mosaic_0001>
module attributes {stable_mosaic.version = 11 : i64} {
  func.func @kernel(%arg0: i32, %arg1: i32, %arg2: memref<8x1x32x128xbf16, #tpu.memory_space<vmem>>, %arg3: memref<640x768xbf16, #tpu.memory_space<vmem>>, %arg4: memref<1x768xf32, #tpu.memory_space<vmem>>, %arg5: memref<1x768xi32, #tpu.memory_space<vmem>>, %arg6: memref<768x128xbf16, #tpu.memory_space<vmem>>, %arg7: memref<1x128xf32, #tpu.memory_space<vmem>>, %arg8: memref<8x128xf32, #tpu.memory_space<vmem>>, %arg9: memref<8x768xf32, #tpu.memory_space<vmem>>) attributes {dimension_semantics = [#tpu.dimension_semantics<parallel>, #tpu.dimension_semantics<arbitrary>], iteration_bounds = array<i64: 1, 1>, scalar_prefetch = 0 : i64, scratch_operands = 1 : i64, tpu.core_type = #tpu.core_type<tc>, window_params = [{transform_indices = @transform_0, window_bounds = array<i64: 8, 1, 32, 128>}, {pipeline_mode = #tpu.pipeline_mode<synchronous>, transform_indices = @transform_1, window_bounds = array<i64: 640, 768>}, {pipeline_mode = #tpu.pipeline_mode<synchronous>, transform_indices = @transform_2, window_bounds = array<i64: 1, 768>}, {pipeline_mode = #tpu.pipeline_mode<synchronous>, transform_indices = @transform_3, window_bounds = array<i64: 1, 768>}, {pipeline_mode = #tpu.pipeline_mode<synchronous>, transform_indices = @transform_4, window_bounds = array<i64: 768, 128>}, {pipeline_mode = #tpu.pipeline_mode<synchronous>, transform_indices = @transform_5, window_bounds = array<i64: 1, 128>}, {transform_indices = @transform_6, window_bounds = array<i64: 8, 128>}]} {
    %c0_i32 = arith.constant 0 : i32
    %0 = arith.cmpi eq, %arg1, %c0_i32 : i32
    %1 = arith.extui %0 : i1 to i32
    %c0_i32_0 = arith.constant 0 : i32
    %2 = arith.cmpi ne, %1, %c0_i32_0 : i32
    scf.if %2 {
      %cst_17 = arith.constant -1.000000e+30 : f32
      %35 = vector.broadcast %cst_17 : f32 to vector<8x768xf32>
      %c0_18 = arith.constant 0 : index
      %c0_19 = arith.constant 0 : index
      %36 = vector.load %arg9[%c0_18, %c0_19] : memref<8x768xf32, #tpu.memory_space<vmem>>, vector<8x768xf32>
      tpu.vector_store %arg9[%c0_18, %c0_19], %35 {strides = array<i32>} : memref<8x768xf32, #tpu.memory_space<vmem>>, vector<8x768xf32>,
    } else {
    }
    %c0 = arith.constant 0 : index
    %c0_1 = arith.constant 0 : index
    %c0_2 = arith.constant 0 : index
    %c0_3 = arith.constant 0 : index
    %3 = vector.load %arg2[%c0, %c0_1, %c0_2, %c0_3] : memref<8x1x32x128xbf16, #tpu.memory_space<vmem>>, vector<8x1x32x128xbf16>
    %4 = vector.shape_cast %3 : vector<8x1x32x128xbf16> to vector<8x32x128xbf16>
    %5 = vector.extract_strided_slice %4 {offsets = [0, 0, 0], sizes = [8, 16, 128], strides = [1, 1, 1]} : vector<8x32x128xbf16> to vector<8x16x128xbf16>
    %6 = vector.extract_strided_slice %4 {offsets = [0, 1, 0], sizes = [8, 16, 128], strides = [1, 1, 1]} : vector<8x32x128xbf16> to vector<8x16x128xbf16>
    %7 = vector.extract_strided_slice %4 {offsets = [0, 2, 0], sizes = [8, 16, 128], strides = [1, 1, 1]} : vector<8x32x128xbf16> to vector<8x16x128xbf16>
    %8 = vector.extract_strided_slice %4 {offsets = [0, 3, 0], sizes = [8, 16, 128], strides = [1, 1, 1]} : vector<8x32x128xbf16> to vector<8x16x128xbf16>
    %9 = vector.extract_strided_slice %4 {offsets = [0, 4, 0], sizes = [8, 16, 128], strides = [1, 1, 1]} : vector<8x32x128xbf16> to vector<8x16x128xbf16>
    %10 = tpu.concatenate %5, %6, %7, %8, %9 in 2 : vector<8x16x128xbf16>, vector<8x16x128xbf16>, vector<8x16x128xbf16>, vector<8x16x128xbf16>, vector<8x16x128xbf16> -> vector<8x16x640xbf16>
    %11 = vector.shape_cast %10 : vector<8x16x640xbf16> to vector<128x640xbf16>
    %c0_4 = arith.constant 0 : index
    %c0_5 = arith.constant 0 : index
    %12 = vector.load %arg3[%c0_4, %c0_5] : memref<640x768xbf16, #tpu.memory_space<vmem>>, vector<640x768xbf16>
    %cst = arith.constant dense<0.000000e+00> : vector<128x768xf32>
    %13 = tpu.matmul %11, %12, %cst {dimension_numbers = #tpu.dot_dimension_numbers<[1], [0], [0], [1], [0, 0, 1, 1], [], []>} : vector<128x640xbf16>, vector<640x768xbf16>, vector<128x768xf32> -> vector<128x768xf32>
    %14 = vector.shape_cast %13 : vector<128x768xf32> to vector<8x16x768xf32>
    %15 = tpu.iota {dimensions = array<i32: 0>} : vector<16x768xi32>
    %c16_i32 = arith.constant 16 : i32
    %16 = arith.muli %arg1, %c16_i32 : i32
    %17 = vector.broadcast %16 : i32 to vector<16x768xi32>
    %18 = arith.addi %15, %17 : vector<16x768xi32>
    %c0_6 = arith.constant 0 : index
    %c0_7 = arith.constant 0 : index
    %19 = vector.load %arg5[%c0_6, %c0_7] : memref<1x768xi32, #tpu.memory_space<vmem>>, vector<1x768xi32>
    %20 = vector.broadcast %19 : vector<1x768xi32> to vector<16x768xi32>
    %21 = arith.cmpi sle, %18, %20 : vector<16x768xi32>
    %cst_8 = arith.constant 0.000000e+00 : f32
    %cst_9 = arith.constant -1.000000e+30 : f32
    %22 = vector.broadcast %cst_8 : f32 to vector<16x768xf32>
    %23 = vector.broadcast %cst_9 : f32 to vector<16x768xf32>
    %24 = arith.select %21, %22, %23 : vector<16x768xi1>, vector<16x768xf32>
    %25 = vector.shape_cast %24 : vector<16x768xf32> to vector<1x16x768xf32>
    %26 = vector.broadcast %25 : vector<1x16x768xf32> to vector<8x16x768xf32>
    %27 = arith.addf %14, %26 : vector<8x16x768xf32>
    %cst_10 = arith.constant dense<0xFF800000> : vector<8x768xf32>
    %28 = vector.multi_reduction <maximumf>, %27, %cst_10 [1] : vector<8x16x768xf32> to vector<8x768xf32>
    %c0_11 = arith.constant 0 : index
    %c0_12 = arith.constant 0 : index
    %29 = vector.load %arg9[%c0_11, %c0_12] : memref<8x768xf32, #tpu.memory_space<vmem>>, vector<8x768xf32>
    %30 = arith.maximumf %29, %28 : vector<8x768xf32>
    %c0_13 = arith.constant 0 : index
    %c0_14 = arith.constant 0 : index
    %31 = vector.load %arg9[%c0_13, %c0_14] : memref<8x768xf32, #tpu.memory_space<vmem>>, vector<8x768xf32>
    tpu.vector_store %arg9[%c0_13, %c0_14], %30 {strides = array<i32>} : memref<8x768xf32, #tpu.memory_space<vmem>>, vector<8x768xf32>,
    %c0_i32_15 = arith.constant 0 : i32
    %32 = arith.cmpi eq, %arg1, %c0_i32_15 : i32
    %33 = arith.extui %32 : i1 to i32
    %c0_i32_16 = arith.constant 0 : i32
    %34 = arith.cmpi ne, %33, %c0_i32_16 : i32
    scf.if %34 {
      %c0_17 = arith.constant 0 : index
      %c0_18 = arith.constant 0 : index
      %35 = vector.load %arg9[%c0_17, %c0_18] : memref<8x768xf32, #tpu.memory_space<vmem>>, vector<8x768xf32>
      %c0_19 = arith.constant 0 : index
      %c0_20 = arith.constant 0 : index
      %36 = vector.load %arg4[%c0_19, %c0_20] : memref<1x768xf32, #tpu.memory_space<vmem>>, vector<1x768xf32>
      %37 = vector.broadcast %36 : vector<1x768xf32> to vector<8x768xf32>
      %38 = arith.addf %35, %37 : vector<8x768xf32>
      %cst_21 = arith.constant 0.000000e+00 : f32
      %39 = vector.broadcast %cst_21 : f32 to vector<8x768xf32>
      %40 = arith.maximumf %38, %39 : vector<8x768xf32>
      %41 = arith.truncf %40 : vector<8x768xf32> to vector<8x768xbf16>
      %c0_22 = arith.constant 0 : index
      %c0_23 = arith.constant 0 : index
      %42 = vector.load %arg6[%c0_22, %c0_23] : memref<768x128xbf16, #tpu.memory_space<vmem>>, vector<768x128xbf16>
      %cst_24 = arith.constant dense<0.000000e+00> : vector<8x128xf32>
      %43 = tpu.matmul %41, %42, %cst_24 {dimension_numbers = #tpu.dot_dimension_numbers<[1], [0], [0], [1], [0, 0, 1, 1], [], []>} : vector<8x768xbf16>, vector<768x128xbf16>, vector<8x128xf32> -> vector<8x128xf32>
      %c0_25 = arith.constant 0 : index
      %c0_26 = arith.constant 0 : index
      %44 = vector.load %arg7[%c0_25, %c0_26] : memref<1x128xf32, #tpu.memory_space<vmem>>, vector<1x128xf32>
      %45 = vector.broadcast %44 : vector<1x128xf32> to vector<8x128xf32>
      %46 = arith.addf %43, %45 : vector<8x128xf32>
      %c0_27 = arith.constant 0 : index
      %c0_28 = arith.constant 0 : index
      %47 = vector.load %arg8[%c0_27, %c0_28] : memref<8x128xf32, #tpu.memory_space<vmem>>, vector<8x128xf32>
      tpu.vector_store %arg8[%c0_27, %c0_28], %46 {strides = array<i32>} : memref<8x128xf32, #tpu.memory_space<vmem>>, vector<8x128xf32>,
    } else {
    }
    return
  }
  func.func @transform_0(%arg0: i32, %arg1: i32) -> (i32, i32, i32, i32) {
    %c0_i32 = arith.constant 0 : i32
    %c0_i32_0 = arith.constant 0 : i32
    %c0_i32_1 = arith.constant 0 : i32
    return %arg0, %arg1, %c0_i32, %c0_i32_0 : i32, i32, i32, i32
  }
  func.func @transform_1(%arg0: i32, %arg1: i32) -> (i32, i32) {
    %c0_i32 = arith.constant 0 : i32
    %c0_i32_0 = arith.constant 0 : i32
    %c0_i32_1 = arith.constant 0 : i32
    return %c0_i32, %c0_i32_0 : i32, i32
  }
  func.func @transform_2(%arg0: i32, %arg1: i32) -> (i32, i32) {
    %c0_i32 = arith.constant 0 : i32
    %c0_i32_0 = arith.constant 0 : i32
    %c0_i32_1 = arith.constant 0 : i32
    return %c0_i32, %c0_i32_0 : i32, i32
  }
  func.func @transform_3(%arg0: i32, %arg1: i32) -> (i32, i32) {
    %c0_i32 = arith.constant 0 : i32
    %c0_i32_0 = arith.constant 0 : i32
    %c0_i32_1 = arith.constant 0 : i32
    return %c0_i32, %c0_i32_0 : i32, i32
  }
  func.func @transform_4(%arg0: i32, %arg1: i32) -> (i32, i32) {
    %c0_i32 = arith.constant 0 : i32
    %c0_i32_0 = arith.constant 0 : i32
    %c0_i32_1 = arith.constant 0 : i32
    return %c0_i32, %c0_i32_0 : i32, i32
  }
  func.func @transform_5(%arg0: i32, %arg1: i32) -> (i32, i32) {
    %c0_i32 = arith.constant 0 : i32
    %c0_i32_0 = arith.constant 0 : i32
    %c0_i32_1 = arith.constant 0 : i32
    return %c0_i32, %c0_i32_0 : i32, i32
  }
  func.func @transform_6(%arg0: i32, %arg1: i32) -> (i32, i32) {
    %c0_i32 = arith.constant 0 : i32
    %c0_i32_0 = arith.constant 0 : i32
    return %arg0, %c0_i32 : i32, i32
  }
}

</mosaic_0001>

<bundles_post_ra>
// kernel: textcnn_forward.1
= control target key start
LH: loop header
LB: loop body
LE: loop exit
PB: predicated region body
PF: predicated region fallthrough
CT: control target
= control target key end

     0   :  { %v5029_v1 = vmov 0   ;;  %vm130_vm0 = vsmask.f32 7424  ;;  %vm349_vm1 = vcmask 1045504   ;;  %vm268_vm2 = vsmask.f32 6400  ;;  %s6757_s1 = inlined_call_operand.vmem [shape: bf16[640,768], index: 1, kind: input, shape index: {}]   ;;  %s6758_s0 = inlined_call_operand.vmem [shape: bf16[8,1,32,128], index: 0, kind: input, shape index: {}]   ;;  %s6759_s4 = inlined_call_operand.vmem [shape: bf16[768,128], index: 4, kind: input, shape index: {}]   ;;  %s6760_s3 = inlined_call_operand.vmem [shape: s32[1,768], index: 3, kind: input, shape index: {}]   ;;  %s6761_s2 = inlined_call_operand.vmem [shape: f32[1,768], index: 2, kind: input, shape index: {}]   ;;  %s6762_s5 = inlined_call_operand.vmem [shape: f32[1,128], index: 5, kind: input, shape index: {}]   ;;  %s6763_s6 = inlined_call_operand.vmem [shape: f32[8,128], index: 6, kind: output, shape index: {}]  }
   0x1   :  { %v4588_v0 = vld [vmem:[%s6757_s1 + $0x4] ss:$24 sps:$4 sm:$0xff]   ;;  %2080 = vmatprep.mubr.bf16.mxu1 %v5029_v1  ;;  %v4592_v3 = vld [vmem:[%s6757_s1] ss:$24 sps:$4 sm:$0xff]   ;;  %v4594_v5 = vld [vmem:[%s6757_s1 + $0x34] ss:$24 sps:$4 sm:$0xff]  }
   0x2   :  { %v4590_v2 = vld [vmem:[%s6757_s1 + $0x604] ss:$24 sps:$4 sm:$0xff]   ;;  %1822 = vmatprep.subr.bf16.mxu0 %v4588_v0  ;;  %v4593_v4 = vld [vmem:[%s6757_s1 + $0x600] ss:$24 sps:$4 sm:$0xff]   ;;  %v4596_v6 = vld [vmem:[%s6757_s1 + $0x634] ss:$24 sps:$4 sm:$0xff]  }
   0x3   :  { %2048 = vmatprep.subr.bf16.mxu1 %v4590_v2  ;;  %1823 = vmatpush1.bf16.msra.mxu0 %v4592_v3  ;;  %v4598_v7 = vld [vmem:[%s6757_s1 + $0x30] ss:$24 sps:$4 sm:$0xff]   ;;  %v4600_v9 = vld [vmem:[%s6757_s1 + $0x64] ss:$24 sps:$4 sm:$0xff]   ;;  %v4604_v11 = vld [vmem:[%s6757_s1 + $0x60] ss:$24 sps:$4 sm:$0xff]  }
   0x4   :  { %2049 = vmatpush1.bf16.msra.mxu1 %v4593_v4  ;;  %1824 = vmatprep.subr.bf16.mxu0 %v4594_v5  ;;  %v4599_v8 = vld [vmem:[%s6757_s1 + $0x630] ss:$24 sps:$4 sm:$0xff]   ;;  %v4602_v10 = vld [vmem:[%s6757_s1 + $0x664] ss:$24 sps:$4 sm:$0xff]   ;;  %v4605_v12 = vld [vmem:[%s6757_s1 + $0x660] ss:$24 sps:$4 sm:$0xff]  }
   0x5   :  { %2050 = vmatprep.subr.bf16.mxu1 %v4596_v6  ;;  %v4606_v13 = vld [vmem:[%s6757_s1 + $0x94] ss:$24 sps:$4 sm:$0xff]   ;;  %v4610_v15 = vld [vmem:[%s6757_s1 + $0x90] ss:$24 sps:$4 sm:$0xff]   ;;  %v4612_v17 = vld [vmem:[%s6757_s1 + $0xc4] ss:$24 sps:$4 sm:$0xff]  }
   0x6   :  { %v4608_v14 = vld [vmem:[%s6757_s1 + $0x694] ss:$24 sps:$4 sm:$0xff]   ;;  %v4611_v16 = vld [vmem:[%s6757_s1 + $0x690] ss:$24 sps:$4 sm:$0xff]   ;;  %v4614_v18 = vld [vmem:[%s6757_s1 + $0x6c4] ss:$24 sps:$4 sm:$0xff]  }
   0x7   :  { %1825 = vmatpush1.bf16.msra.mxu0 %v4598_v7  ;;  %v4616_v19 = vld [vmem:[%s6757_s1 + $0xc0] ss:$24 sps:$4 sm:$0xff]   ;;  %v4618_v21 = vld [vmem:[%s6757_s1 + $0xf4] ss:$24 sps:$4 sm:$0xff]   ;;  %v4622_v23 = vld [vmem:[%s6757_s1 + $0xf0] ss:$24 sps:$4 sm:$0xff]  }
   0x8   :  { %2051 = vmatpush1.bf16.msra.mxu1 %v4599_v8  ;;  %1826 = vmatprep.subr.bf16.mxu0 %v4600_v9  ;;  %v4617_v20 = vld [vmem:[%s6757_s1 + $0x6c0] ss:$24 sps:$4 sm:$0xff]   ;;  %v4620_v22 = vld [vmem:[%s6757_s1 + $0x6f4] ss:$24 sps:$4 sm:$0xff]   ;;  %v4623_v24 = vld [vmem:[%s6757_s1 + $0x6f0] ss:$24 sps:$4 sm:$0xff]  }
   0x9   :  { %2052 = vmatprep.subr.bf16.mxu1 %v4602_v10  ;;  %v4624_v25 = vld [vmem:[%s6757_s1 + $0x124] ss:$24 sps:$4 sm:$0xff]   ;;  %v4628_v27 = vld [vmem:[%s6757_s1 + $0x120] ss:$24 sps:$4 sm:$0xff]   ;;  %v4639_v30 = vld [vmem:[%s6758_s0 + $0x8] ss:$0 sps:$4 sm:$0xff]  }
   0xa   :  { %v4626_v26 = vld [vmem:[%s6757_s1 + $0x724] ss:$24 sps:$4 sm:$0xff]   ;;  %v4629_v28 = vld [vmem:[%s6757_s1 + $0x720] ss:$24 sps:$4 sm:$0xff]   ;;  %v4630_v31 = vld [vmem:[%s6757_s1 + $0x154] ss:$24 sps:$4 sm:$0xff]  }
   0xb   :  { %1827 = vmatpush1.bf16.msra.mxu0 %v4604_v11  ;;  %v5154_v29 = vld [vmem:[%s6758_s0] sm:$0xff]   ;;  %v4632_v32 = vld [vmem:[%s6757_s1 + $0x754] ss:$24 sps:$4 sm:$0xff]   ;;  %v4634_v33 = vld [vmem:[%s6757_s1 + $0x150] ss:$24 sps:$4 sm:$0xff]   ;;  %v139_v37 = vshll.u32 %v4639_v30, 16 }
   0xc   :  { %2053 = vmatpush1.bf16.msra.mxu1 %v4605_v12  ;;  %1828 = vmatprep.subr.bf16.mxu0 %v4606_v13  ;;  %v132_v34 = vshrl.u32 %v5154_v29, 16  ;;  %v134_v35 = vshll.u32 %v5154_v29, 16  ;;  %v4635_v36 = vld [vmem:[%s6757_s1 + $0x750] ss:$24 sps:$4 sm:$0xff]   ;;  %v4636_v38 = vld [vmem:[%s6757_s1 + $0x184] ss:$24 sps:$4 sm:$0xff]  }
   0xd   :  { %2054 = vmatprep.subr.bf16.mxu1 %v4608_v14  ;;  %v350_v39 = vrot.slane %v5154_v29, 2  ;;  %v351_v40 = vrot.slane %v4639_v30, 2  ;;  %v4642_v42 = vld [vmem:[%s6757_s1 + $0xc] ss:$24 sps:$4 sm:$0xff]   ;;  %v141_v43 = vrot.slane %v139_v37, 1  ;;  %v5192_v50 = vld [vmem:[%s6758_s0 + $0x10] sm:$0xff]  }
   0xe   :  { %v136_v41 = vrot.slane %v134_v35, 1  ;;  %v4640_v44 = vld [vmem:[%s6757_s1 + $0x8] ss:$24 sps:$4 sm:$0xff]   ;;  %v269_v46 = vrot.slane %v132_v34, 1  ;;  %v270_v48 = vrot.slane %v134_v35, 2  ;;  %v272_v53 = vshrl.u32 %v4639_v30, 16 }
   0xf   :  { %1829 = vmatpush1.bf16.msra.mxu0 %v4610_v15  ;;  %v4643_v47 = vld [vmem:[%s6757_s1 + $0x180] ss:$24 sps:$4 sm:$0xff]   ;;  %v5187_v49 = vsel %vm349_vm1, %v350_v39, %v351_v40  ;;  %v4644_v54 = vld [vmem:[%s6757_s1 + $0x1b4] ss:$24 sps:$4 sm:$0xff]   ;;  %v4649_v58 = vld [vmem:[%s6757_s1 + $0x1b0] ss:$24 sps:$4 sm:$0xff]  }
  0x10   :  { %2055 = vmatpush1.bf16.msra.mxu1 %v4611_v16  ;;  %1830 = vmatprep.subr.bf16.mxu0 %v4612_v17  ;;  %v137_v45 = vor.u32 %v136_v41, %v132_v34  ;;  %v5197_v51 = vld [vmem:[%s6758_s0 + $0x18] ss:$0 sps:$4 sm:$0xff]   ;;  %v4648_v55 = vld [vmem:[%s6757_s1 + $0x3c] ss:$24 sps:$4 sm:$0xff]   ;;  %v271_v56 = vor.u32 %v270_v48, %v269_v46  ;;  %v353_v60 = vrot.slane %v5192_v50, 2  ;;  %v274_v62 = vrot.slane %v272_v53, 1 }
  0x11   :  { %2056 = vmatprep.subr.bf16.mxu1 %v4614_v18  ;;  %v4646_v57 = vld [vmem:[%s6757_s1 + $0x38] ss:$24 sps:$4 sm:$0xff]   ;;  %v4650_v59 = vld [vmem:[%s6757_s1 + $0x1e4] ss:$24 sps:$4 sm:$0xff]   ;;  %v354_v61 = vrot.slane %v5197_v51, 2  ;;  %v275_v2 = vrot.slane %v139_v37, 2 }
  0x12   :  { %v5200_v52 = vsel %vm130_vm0, %v137_v45, %v141_v43  ;;  %v4656_v63 = vld [vmem:[%s6757_s1 + $0x6c] ss:$24 sps:$4 sm:$0xff]   ;;  %v4654_v0 = vld [vmem:[%s6757_s1 + $0x68] ss:$24 sps:$4 sm:$0xff]   ;;  %v4662_v9 = vld [vmem:[%s6757_s1 + $0x9c] ss:$24 sps:$4 sm:$0xff]  }
  0x13   :  { %1831 = vmatpush1.bf16.msra.mxu0 %v4616_v19  ;;  %1854 = vmatprep.mubr.bf16.mxu0 %v5200_v52  ;;  %v4657_v3 = vld [vmem:[%s6757_s1 + $0x1e0] ss:$24 sps:$4 sm:$0xff]   ;;  %v4658_v4 = vld [vmem:[%s6757_s1 + $0x214] ss:$24 sps:$4 sm:$0xff]   ;;  %v5235_v5 = vsel %vm349_vm1, %v353_v60, %v354_v61  ;;  %v5245_v7 = vld [vmem:[%s6758_s0 + $0x28] ss:$0 sps:$4 sm:$0xff]   ;;  %v276_v8 = vor.u32 %v275_v2, %v274_v62 }
  0x14   :  { %2057 = vmatpush1.bf16.msra.mxu1 %v4617_v20  ;;  %1832 = vmatprep.subr.bf16.mxu0 %v4618_v21  ;;  %v5240_v6 = vld [vmem:[%s6758_s0 + $0x20] sm:$0xff]   ;;  %v4660_v10 = vld [vmem:[%s6757_s1 + $0x98] ss:$24 sps:$4 sm:$0xff]   ;;  %v357_v15 = vrot.slane %v5245_v7, 2  ;;  %v151_v35 = vshll.u32 %v5197_v51, 16  ;;  %vm235_vm3 = vcmask 1046528  }
  0x15   :  { %2058 = vmatprep.subr.bf16.mxu1 %v4620_v22  ;;  %v4663_v11 = vld [vmem:[%s6757_s1 + $0x210] ss:$24 sps:$4 sm:$0xff]   ;;  %v5257_v12 = vsel %vm268_vm2, %v271_v56, %v276_v8  ;;  %v4664_v13 = vld [vmem:[%s6757_s1 + $0x244] ss:$24 sps:$4 sm:$0xff]   ;;  %v356_v14 = vrot.slane %v5240_v6, 2  ;;  %vm3381_vm8 = vcmask 1041409  }
  0x16   :  { %v4670_v16 = vld [vmem:[%s6757_s1 + $0xcc] ss:$24 sps:$4 sm:$0xff]   ;;  %v4668_v17 = vld [vmem:[%s6757_s1 + $0xc8] ss:$24 sps:$4 sm:$0xff]   ;;  %v5278_v19 = vld [vmem:[%s6758_s0 + $0x30] sm:$0xff]   ;;  %vm3383_vm9 = vcmask 1042434  }
  0x17   :  { %1833 = vmatpush1.bf16.msra.mxu0 %v4622_v23  ;;  %v4671_v18 = vld [vmem:[%s6757_s1 + $0x240] ss:$24 sps:$4 sm:$0xff]   ;;  %v5281_v20 = vsel %vm349_vm1, %v356_v14, %v357_v15  ;;  %v4672_v22 = vld [vmem:[%s6757_s1 + $0x274] ss:$24 sps:$4 sm:$0xff]   ;;  %v5331_v39 = vld [vmem:[%s6758_s0 + $0x48] ss:$0 sps:$4 sm:$0xff]  }
  0x18   :  { %2059 = vmatpush1.bf16.msra.mxu1 %v4623_v24  ;;  %1834 = vmatprep.subr.bf16.mxu0 %v4624_v25  ;;  %v5286_v21 = vld [vmem:[%s6758_s0 + $0x38] ss:$0 sps:$4 sm:$0xff]   ;;  %v4676_v23 = vld [vmem:[%s6757_s1 + $0xfc] ss:$24 sps:$4 sm:$0xff]   ;;  %v4677_v25 = vld [vmem:[%s6757_s1 + $0x270] ss:$24 sps:$4 sm:$0xff]  }
  0x19   :  { %2060 = vmatprep.subr.bf16.mxu1 %v4626_v26  ;;  %v4674_v24 = vld [vmem:[%s6757_s1 + $0xf8] ss:$24 sps:$4 sm:$0xff]   ;;  %v359_v26 = vrot.slane %v5278_v19, 2  ;;  %v4684_v30 = vld [vmem:[%s6757_s1 + $0x12c] ss:$24 sps:$4 sm:$0xff]   ;;  %v363_v53 = vrot.slane %v5331_v39, 2 }
  0x1a   :  { %v4685_v34 = vld [vmem:[%s6757_s1 + $0x2a0] ss:$24 sps:$4 sm:$0xff]   ;;  %v4690_v43 = vld [vmem:[%s6757_s1 + $0x15c] ss:$24 sps:$4 sm:$0xff]   ;;  %v4691_v46 = vld [vmem:[%s6757_s1 + $0x2d0] ss:$24 sps:$4 sm:$0xff]  }
  0x1b   :  { %1835 = vmatpush1.bf16.msra.mxu0 %v4628_v27  ;;  %v360_v27 = vrot.slane %v5286_v21, 2  ;;  %v4688_v45 = vld [vmem:[%s6757_s1 + $0x158] ss:$24 sps:$4 sm:$0xff]   ;;  %v4694_v48 = vld [vmem:[%s6757_s1 + $0x304] ss:$24 sps:$4 sm:$0xff]   ;;  %vm3385_vm10 = vcmask 1043459  }
  0x1c   :  { %2061 = vmatpush1.bf16.msra.mxu1 %v4629_v28  ;;  %1836 = vmatprep.subr.bf16.mxu0 %v4630_v31  ;;  %v4678_v28 = vld [vmem:[%s6757_s1 + $0x2a4] ss:$24 sps:$4 sm:$0xff]   ;;  %v146_v31 = vshll.u32 %v5192_v50, 16  ;;  %v4702_v61 = vld [vmem:[%s6757_s1 + $0x334] ss:$24 sps:$4 sm:$0xff]   ;;  %vm3387_vm11 = vcmask 1044484  }
  0x1d   :  { %2062 = vmatprep.subr.bf16.mxu1 %v4632_v32  ;;  %v4682_v32 = vld [vmem:[%s6757_s1 + $0x128] ss:$24 sps:$4 sm:$0xff]   ;;  %v5321_v37 = vsel %vm349_vm1, %v359_v26, %v360_v27  ;;  %v4699_v56 = vld [vmem:[%s6757_s1 + $0x18c] ss:$24 sps:$4 sm:$0xff]   ;;  %v4705_v62 = vld [vmem:[%s6757_s1 + $0x1bc] ss:$24 sps:$4 sm:$0xff]  }
  0x1e   :  { %v279_v41 = vrot.slane %v146_v31, 2  ;;  %v5418_v27 = vld [vmem:[%s6758_s0 + $0x60] sm:$0xff]   ;;  %vm3389_vm12 = vcmask 1045509   ;;  %vm3391_vm13 = vcmask 1046534   ;;  %vm3393_vm14 = vcmask 1047559  }
  0x1f   :  { %1837 = vmatpush1.bf16.msra.mxu0 %v4634_v33  ;;  %v144_v33 = vshrl.u32 %v5192_v50, 16 }
  0x20   :  { %2063 = vmatpush1.bf16.msra.mxu1 %v4635_v36  ;;  %1838 = vmatprep.subr.bf16.mxu0 %v4636_v38  ;;  %v281_v36 = vshrl.u32 %v5197_v51, 16  ;;  %v5326_v38 = vld [vmem:[%s6758_s0 + $0x40] sm:$0xff]  }
  0x21   :  { %2161 = vmatprep.subr.bf16.mxu1 %v4642_v42  ;;  %v278_v40 = vrot.slane %v144_v33, 1  ;;  %v4686_v42 = vld [vmem:[%s6757_s1 + $0x2d4] ss:$24 sps:$4 sm:$0xff]   ;;  %v362_v51 = vrot.slane %v5326_v38, 2 }
  0x23   :  { %2081 = vmatmul.mubr.bf16.vlgmr.msra.gmra.mrb[0].mxu1 %v5187_v49  ;;  %1839 = vmatpush1.bf16.msra.mxu0 %v4643_v47  ;;  %v283_v47 = vrot.slane %v281_v36, 1  ;;  %v5369_v2 = vsel %vm349_vm1, %v362_v51, %v363_v53  ;;  %v175_v36 = vshll.u32 %v5286_v21, 16  ;;  %v4727_v53 = vld [vmem:[%s6757_s1 + $0x24c] ss:$24 sps:$4 sm:$0xff]  }
  0x24   :  { %2162 = vmatpush1.bf16.msra.mxu1 %v4640_v44  ;;  %1840 = vmatprep.subr.bf16.mxu0 %v4644_v54  ;;  %v148_v44 = vrot.slane %v146_v31, 1  ;;  %v280_v54 = vor.u32 %v279_v41, %v278_v40  ;;  %v5445_v40 = vld [vmem:[%s6758_s0 + $0x70] sm:$0xff]  }
  0x25   :  { %2163 = vmatprep.subr.bf16.mxu1 %v4648_v55  ;;  %2090 = vmatprep.mubr.bf16.mxu1 %v5029_v1  ;;  %v284_v55 = vrot.slane %v151_v35, 2  ;;  %v218_v51 = vshll.u32 %v5445_v40, 16 }
  0x27   :  { %1841 = vmatpush1.bf16.msra.mxu0 %v4649_v58  ;;  %v4697_v58 = vld [vmem:[%s6757_s1 + $0x188] ss:$24 sps:$4 sm:$0xff]   ;;  %v285_v60 = vor.u32 %v284_v55, %v283_v47 }
  0x28   :  { %2164 = vmatpush1.bf16.msra.mxu1 %v4646_v57  ;;  %1842 = vmatprep.subr.bf16.mxu0 %v4650_v59  ;;  %v4692_v57 = vld [vmem:[%s6757_s1 + $0x300] ss:$24 sps:$4 sm:$0xff]   ;;  %v153_v59 = vrot.slane %v151_v35, 1 }
  0x29   :  { %2165 = vmatprep.subr.bf16.mxu1 %v4656_v63  ;;  %v149_v63 = vor.u32 %v148_v44, %v144_v33  ;;  %v5382_v8 = vsel %vm268_vm2, %v280_v54, %v285_v60  ;;  %v4719_v33 = vld [vmem:[%s6757_s1 + $0x21c] ss:$24 sps:$4 sm:$0xff]   ;;  %v4717_v35 = vld [vmem:[%s6757_s1 + $0x218] ss:$24 sps:$4 sm:$0xff]  }
  0x2a   :  { %v4720_v60 = vld [vmem:[%s6757_s1 + $0x3c0] ss:$24 sps:$4 sm:$0xff]  }
  0x2b   :  { %2091 = vmatmul.mubr.bf16.gmra.mrb[4].mxu1 %v5235_v5  ;;  %1843 = vmatpush1.bf16.msra.mxu0 %v4657_v3  ;;  %v5374_v3 = vld [vmem:[%s6758_s0 + $0x50] sm:$0xff]   ;;  %v5395_v14 = vsel %vm130_vm0, %v149_v63, %v153_v59  ;;  %v220_v59 = vrot.slane %v218_v51, 1  ;;  %v290_v63 = vshrl.u32 %v5245_v7, 16 }
  0x2c   :  { %2166 = vmatpush1.bf16.msra.mxu1 %v4654_v0  ;;  %1844 = vmatprep.subr.bf16.mxu0 %v4658_v4  ;;  %v158_v0 = vshll.u32 %v5240_v6, 16  ;;  %v5379_v4 = vld [vmem:[%s6758_s0 + $0x58] ss:$0 sps:$4 sm:$0xff]  }
  0x2d   :  { %2167 = vmatprep.subr.bf16.mxu1 %v4662_v9  ;;  %2100 = vmatprep.mubr.bf16.mxu1 %v5029_v1  ;;  %v156_v9 = vshrl.u32 %v5240_v6, 16 }
  0x2e   :  { %v160_v15 = vrot.slane %v158_v0, 1 }
  0x2f   :  { %1845 = vmatpush1.bf16.msra.mxu0 %v4663_v11  ;;  %v4700_v11 = vld [vmem:[%s6757_s1 + $0x330] ss:$24 sps:$4 sm:$0xff]   ;;  %v287_v55 = vrot.slane %v156_v9, 1 }
  0x30   :  { %2168 = vmatpush1.bf16.msra.mxu1 %v4660_v10  ;;  %1846 = vmatprep.subr.bf16.mxu0 %v4664_v13  ;;  %v163_v10 = vshll.u32 %v5245_v7, 16  ;;  %v4703_v13 = vld [vmem:[%s6757_s1 + $0x1b8] ss:$24 sps:$4 sm:$0xff]  }
  0x31   :  { %2169 = vmatprep.subr.bf16.mxu1 %v4670_v16  ;;  %v4708_v16 = vld [vmem:[%s6757_s1 + $0x364] ss:$24 sps:$4 sm:$0xff]  }
  0x32   :  { %v165_v26 = vrot.slane %v163_v10, 1 }
  0x33   :  { %2101 = vmatmul.mubr.bf16.gmra.mrb[8].mxu1 %v5281_v20  ;;  %1847 = vmatpush1.bf16.msra.mxu0 %v4671_v18  ;;  %v366_v18 = vrot.slane %v5379_v4, 2 }
  0x34   :  { %2170 = vmatpush1.bf16.msra.mxu1 %v4668_v17  ;;  %1848 = vmatprep.subr.bf16.mxu0 %v4672_v22  ;;  %v365_v17 = vrot.slane %v5374_v3, 2  ;;  %v4713_v22 = vld [vmem:[%s6757_s1 + $0x1ec] ss:$24 sps:$4 sm:$0xff]  }
  0x35   :  { %2171 = vmatprep.subr.bf16.mxu1 %v4676_v23  ;;  %2110 = vmatprep.mubr.bf16.mxu1 %v5029_v1  ;;  %v4706_v23 = vld [vmem:[%s6757_s1 + $0x360] ss:$24 sps:$4 sm:$0xff]  }
  0x36   :  { %v5427_v31 = vsel %vm349_vm1, %v365_v17, %v366_v18  ;;  %v292_v18 = vrot.slane %v290_v63, 1 }
  0x37   :  { %1849 = vmatpush1.bf16.msra.mxu0 %v4677_v25  ;;  %v161_v25 = vor.u32 %v160_v15, %v156_v9  ;;  %v4725_v9 = vld [vmem:[%s6757_s1 + $0x248] ss:$24 sps:$4 sm:$0xff]   ;;  %v4730_v15 = vld [vmem:[%s6757_s1 + $0x3f4] ss:$24 sps:$4 sm:$0xff]  }
  0x38   :  { %2172 = vmatpush1.bf16.msra.mxu1 %v4674_v24  ;;  %1850 = vmatprep.subr.bf16.mxu0 %v4678_v28  ;;  %v4711_v24 = vld [vmem:[%s6757_s1 + $0x1e8] ss:$24 sps:$4 sm:$0xff]  }
  0x39   :  { %2173 = vmatprep.subr.bf16.mxu1 %v4684_v30  ;;  %v5423_v28 = vld [vmem:[%s6758_s0 + $0x68] ss:$0 sps:$4 sm:$0xff]   ;;  %v170_v30 = vshll.u32 %v5278_v19, 16  ;;  %v5450_v41 = vsel %vm130_vm0, %v161_v25, %v165_v26  ;;  %v4731_v25 = vld [vmem:[%s6757_s1 + $0x278] ss:$24 sps:$4 sm:$0xff]  }
  0x3a   :  { %v369_v47 = vrot.slane %v5423_v28, 2 }
  0x3b   :  { %2111 = vmatmul.mubr.bf16.gmra.mrb[12].mxu1 %v5321_v37  ;;  %1851 = vmatpush1.bf16.msra.mxu0 %v4685_v34  ;;  %v4714_v34 = vld [vmem:[%s6757_s1 + $0x390] ss:$24 sps:$4 sm:$0xff]   ;;  %v172_v44 = vrot.slane %v170_v30, 1 }
  0x3c   :  { %2174 = vmatpush1.bf16.msra.mxu1 %v4682_v32  ;;  %1852 = vmatprep.subr.bf16.mxu0 %v4686_v42  ;;  %v4716_v32 = vld [vmem:[%s6757_s1 + $0x394] ss:$24 sps:$4 sm:$0xff]   ;;  %v4722_v42 = vld [vmem:[%s6757_s1 + $0x3c4] ss:$24 sps:$4 sm:$0xff]  }
  0x3d   :  { %2175 = vmatprep.subr.bf16.mxu1 %v4690_v43  ;;  %2120 = vmatprep.mubr.bf16.mxu1 %v5029_v1  ;;  %v168_v43 = vshrl.u32 %v5278_v19, 16 }
  0x3f   :  { %1853 = vmatpush1.bf16.msra.mxu0 %v4691_v46  ;;  %v368_v46 = vrot.slane %v5418_v27, 2 }
  0x40   :  { %2176 = vmatpush1.bf16.msra.mxu1 %v4688_v45  ;;  %1935 = vmatprep.subr.bf16.mxu0 %v4694_v48  ;;  %v5459_v45 = vld [vmem:[%s6758_s0 + $0x78] ss:$0 sps:$4 sm:$0xff]   ;;  %v216_v48 = vshrl.u32 %v5445_v40, 16 }
  0x41   :  { %2177 = vmatprep.subr.bf16.mxu1 %v4699_v56  ;;  %v223_v54 = vshll.u32 %v5459_v45, 16  ;;  %v288_v56 = vrot.slane %v158_v0, 2  ;;  %v5481_v0 = vsel %vm349_vm1, %v368_v46, %v369_v47  ;;  %v302_v46 = vrot.slane %v175_v36, 2  ;;  %v4736_v47 = vld [vmem:[%s6757_s1 + $0x424] ss:$24 sps:$4 sm:$0xff]  }
  0x42   :  { %1855 = vmatmul.mubr.bf16.vlgmr.msra.gmra.mrb[0].mxu0 %v5154_v29 }
  0x43   :  { %2121 = vmatmul.mubr.bf16.gmra.mrb[16].mxu1 %v5369_v2  ;;  %1936 = vmatpush1.bf16.msra.mxu0 %v4692_v57  ;;  %v177_v57 = vrot.slane %v175_v36, 1  ;;  %v289_v17 = vor.u32 %v288_v56, %v287_v55  ;;  %v4734_v55 = vld [vmem:[%s6757_s1 + $0x420] ss:$24 sps:$4 sm:$0xff]  }
  0x44   :  { %2178 = vmatpush1.bf16.msra.mxu1 %v4697_v58  ;;  %1937 = vmatprep.subr.bf16.mxu0 %v4702_v61  ;;  %v182_v58 = vshll.u32 %v5326_v38, 16  ;;  %v173_v61 = vor.u32 %v172_v44, %v168_v43  ;;  %v299_v44 = vshrl.u32 %v5286_v21, 16 }
  0x45   :  { %2179 = vmatprep.subr.bf16.mxu1 %v4705_v62  ;;  %1864 = vmatprep.mubr.bf16.mxu0 %v5395_v14  ;;  %v225_v62 = vrot.slane %v223_v54, 1 }
  0x46   :  { %2130 = vmatprep.mubr.bf16.mxu1 %v5029_v1  ;;  %v184_v7 = vrot.slane %v182_v58, 1  ;;  %v5510_v26 = vsel %vm130_vm0, %v173_v61, %v177_v57  ;;  %v301_v36 = vrot.slane %v299_v44, 1  ;;  %v194_v57 = vshll.u32 %v5374_v3, 16  ;;  %v4739_v61 = vld [vmem:[%s6757_s1 + $0x2a8] ss:$24 sps:$4 sm:$0xff]  }
  0x47   :  { %1938 = vmatpush1.bf16.msra.mxu0 %v4700_v11  ;;  %v221_v11 = vor.u32 %v220_v59, %v216_v48  ;;  %v306_v63 = vrot.slane %v182_v58, 2 }
  0x48   :  { %2180 = vmatpush1.bf16.msra.mxu1 %v4703_v13  ;;  %1939 = vmatprep.subr.bf16.mxu0 %v4708_v16  ;;  %v293_v13 = vrot.slane %v163_v10, 2  ;;  %v4733_v16 = vld [vmem:[%s6757_s1 + $0x27c] ss:$24 sps:$4 sm:$0xff]   ;;  %v187_v10 = vshll.u32 %v5331_v39, 16 }
  0x49   :  { %2181 = vmatprep.subr.bf16.mxu1 %v4713_v22  ;;  %v4728_v22 = vld [vmem:[%s6757_s1 + $0x3f0] ss:$24 sps:$4 sm:$0xff]  }
  0x4a   :  { %1865 = vmatmul.mubr.bf16.gmra.mrb[4].mxu0 %v5192_v50 }
  0x4b   :  { %2131 = vmatmul.mubr.bf16.gmra.mrb[20].mxu1 %v5427_v31  ;;  %1940 = vmatpush1.bf16.msra.mxu0 %v4706_v23  ;;  %v180_v23 = vshrl.u32 %v5326_v38, 16 }
  0x4c   :  { %2182 = vmatpush1.bf16.msra.mxu1 %v4711_v24  ;;  %1941 = vmatprep.subr.bf16.mxu0 %v4716_v32  ;;  %v5502_v24 = vsel %vm130_vm0, %v221_v11, %v225_v62  ;;  %v294_v32 = vor.u32 %v293_v13, %v292_v18  ;;  %v303_v62 = vor.u32 %v302_v46, %v301_v36  ;;  %v4744_v11 = vld [vmem:[%s6757_s1 + $0x454] ss:$24 sps:$4 sm:$0xff]   ;;  %v206_v46 = vshll.u32 %v5418_v27, 16  ;;  %v4754_v36 = vld [vmem:[%s6757_s1 + $0x4b0] ss:$24 sps:$4 sm:$0xff]  }
  0x4d   :  { %2183 = vmatprep.subr.bf16.mxu1 %v4719_v33  ;;  %1874 = vmatprep.mubr.bf16.mxu0 %v5450_v41  ;;  %v296_v33 = vrot.slane %v168_v43, 1  ;;  %v4741_v43 = vld [vmem:[%s6757_s1 + $0x2ac] ss:$24 sps:$4 sm:$0xff]   ;;  %v185_v56 = vor.u32 %v184_v7, %v180_v23  ;;  %v305_v59 = vrot.slane %v180_v23, 1  ;;  %v4747_v13 = vld [vmem:[%s6757_s1 + $0x2dc] ss:$24 sps:$4 sm:$0xff]  }
  0x4e   :  { %2140 = vmatprep.mubr.bf16.mxu1 %v5029_v1  ;;  %v196_v23 = vrot.slane %v194_v57, 1  ;;  %v199_v7 = vshll.u32 %v5379_v4, 16 }
  0x4f   :  { %1942 = vmatpush1.bf16.msra.mxu0 %v4714_v34  ;;  %v297_v34 = vrot.slane %v170_v30, 2  ;;  %v5522_v30 = vsel %vm268_vm2, %v289_v17, %v294_v32  ;;  %v307_v18 = vor.u32 %v306_v63, %v305_v59  ;;  %v4750_v32 = vld [vmem:[%s6757_s1 + $0x484] ss:$24 sps:$4 sm:$0xff]   ;;  %v208_v59 = vrot.slane %v206_v46, 1 }
  0x50   :  { %2184 = vmatpush1.bf16.msra.mxu1 %v4717_v35  ;;  %1943 = vmatprep.subr.bf16.mxu0 %v4722_v42  ;;  %v371_v35 = vrot.slane %v5445_v40, 2  ;;  %v372_v42 = vrot.slane %v5459_v45, 2  ;;  %v201_v44 = vrot.slane %v199_v7, 1 }
  0x51   :  { %2185 = vmatprep.subr.bf16.mxu1 %v4727_v53  ;;  %v189_v53 = vrot.slane %v187_v10, 1  ;;  %v298_v21 = vor.u32 %v297_v34, %v296_v33  ;;  %v4753_v33 = vld [vmem:[%s6757_s1 + $0x30c] ss:$24 sps:$4 sm:$0xff]  }
  0x52   :  { %1875 = vmatmul.mubr.bf16.gmra.mrb[8].mxu0 %v5240_v6 }
  0x53   :  { %2141 = vmatmul.mubr.bf16.gmra.mrb[24].mxu1 %v5481_v0  ;;  %1944 = vmatpush1.bf16.msra.mxu0 %v4720_v60  ;;  %v5531_v60 = vsel %vm349_vm1, %v371_v35, %v372_v42  ;;  %v5545_v17 = vsel %vm268_vm2, %v298_v21, %v303_v62  ;;  %v4748_v35 = vld [vmem:[%s6757_s1 + $0x480] ss:$24 sps:$4 sm:$0xff]   ;;  %v211_v21 = vshll.u32 %v5423_v28, 16  ;;  %v4765_v62 = vld [vmem:[%s6757_s1 + $0x36c] ss:$24 sps:$4 sm:$0xff]  }
  0x54   :  { %2186 = vmatpush1.bf16.msra.mxu1 %v4725_v9  ;;  %1945 = vmatprep.subr.bf16.mxu0 %v4730_v15  ;;  %v308_v9 = vshrl.u32 %v5331_v39, 16  ;;  %v311_v15 = vrot.slane %v187_v10, 2  ;;  %v4742_v39 = vld [vmem:[%s6757_s1 + $0x450] ss:$24 sps:$4 sm:$0xff]  }
  0x55   :  { %2187 = vmatprep.subr.bf16.mxu1 %v4733_v16  ;;  %1884 = vmatprep.mubr.bf16.mxu0 %v5510_v26  ;;  %v192_v16 = vshrl.u32 %v5374_v3, 16  ;;  %v4745_v10 = vld [vmem:[%s6757_s1 + $0x2d8] ss:$24 sps:$4 sm:$0xff]   ;;  %v213_v63 = vrot.slane %v211_v21, 1 }
  0x56   :  { %2150 = vmatprep.mubr.bf16.mxu1 %v5029_v1  ;;  %v310_v58 = vrot.slane %v308_v9, 1  ;;  %v4760_v9 = vld [vmem:[%s6757_s1 + $0x4e0] ss:$24 sps:$4 sm:$0xff]  }
  0x57   :  { %1946 = vmatpush1.bf16.msra.mxu0 %v4728_v22  ;;  %v5553_v22 = vsel %vm130_vm0, %v185_v56, %v189_v53  ;;  %v197_v42 = vor.u32 %v196_v23, %v192_v16  ;;  %v4759_v53 = vld [vmem:[%s6757_s1 + $0x33c] ss:$24 sps:$4 sm:$0xff]   ;;  %v204_v56 = vshrl.u32 %v5418_v27, 16 }
  0x58   :  { %2188 = vmatpush1.bf16.msra.mxu1 %v4731_v25  ;;  %1947 = vmatprep.subr.bf16.mxu0 %v4736_v47  ;;  %v312_v25 = vor.u32 %v311_v15, %v310_v58  ;;  %v4751_v47 = vld [vmem:[%s6757_s1 + $0x308] ss:$24 sps:$4 sm:$0xff]   ;;  %v5622_v15 = vrot.slane %v223_v54, 2  ;;  %v4768_v58 = vld [vmem:[%s6757_s1 + $0x514] ss:$24 sps:$4 sm:$0xff]  }
  0x59   :  { %2189 = vmatprep.subr.bf16.mxu1 %v4741_v43  ;;  %v4756_v43 = vld [vmem:[%s6757_s1 + $0x4b4] ss:$24 sps:$4 sm:$0xff]  }
  0x5a   :  { %1885 = vmatmul.mubr.bf16.gmra.mrb[12].mxu0 %v5278_v19  ;;  %v5570_v34 = vsel %vm268_vm2, %v307_v18, %v312_v25  ;;  %v4763_v18 = vld [vmem:[%s6757_s1 + $0x368] ss:$24 sps:$4 sm:$0xff]   ;;  %v4769_v25 = vld [vmem:[%s6757_s1 + $0x398] ss:$24 sps:$4 sm:$0xff]  }
  0x5b   :  { %2151 = vmatmul.mubr.bf16.gmra.mrb[28].mxu1 %v5531_v60  ;;  %1948 = vmatpush1.bf16.msra.mxu0 %v4734_v55  ;;  %v5596_v55 = vsel %vm130_vm0, %v197_v42, %v201_v44  ;;  %v4780_v42 = vld [vmem:[%s6757_s1 + $0x574] ss:$24 sps:$4 sm:$0xff]  }
  0x5c   :  { %2190 = vmatpush1.bf16.msra.mxu1 %v4739_v61  ;;  %1949 = vmatprep.subr.bf16.mxu0 %v4744_v11  ;;  %v4757_v61 = vld [vmem:[%s6757_s1 + $0x338] ss:$24 sps:$4 sm:$0xff]   ;;  %v209_v11 = vor.u32 %v208_v59, %v204_v56  ;;  %v4783_v44 = vld [vmem:[%s6757_s1 + $0x3fc] ss:$24 sps:$4 sm:$0xff]   ;;  %v4787_v59 = vld [vmem:[%s6757_s1 + $0x428] ss:$24 sps:$4 sm:$0xff]  }
  0x5d   :  { %2191 = vmatprep.subr.bf16.mxu1 %v4747_v13  ;;  %1894 = vmatprep.mubr.bf16.mxu0 %v5553_v22  ;;  %v335_v13 = vshrl.u32 %v5459_v45, 16  ;;  %v4766_v45 = vld [vmem:[%s6757_s1 + $0x510] ss:$24 sps:$4 sm:$0xff]  }
  0x5e   :  { %2193 = vmatprep.mubr.bf16.mxu1 %v5200_v52  ;;  %v5641_v54 = vsel %vm130_vm0, %v209_v11, %v213_v63  ;;  %v4793_v63 = vld [vmem:[%s6757_s1 + $0x458] ss:$24 sps:$4 sm:$0xff]  }
  0x5f   :  { %1950 = vmatpush1.bf16.msra.mxu0 %v4742_v39  ;;  %v4771_v39 = vld [vmem:[%s6757_s1 + $0x39c] ss:$24 sps:$4 sm:$0xff]   ;;  %v5633_v23 = vrot.slane %v335_v13, 1 }
  0x60   :  { %2192 = vmatpush1.bf16.msra.mxu1 %v4745_v10  ;;  %1951 = vmatprep.subr.bf16.mxu0 %v4750_v32  ;;  %v4777_v32 = vld [vmem:[%s6757_s1 + $0x3cc] ss:$24 sps:$4 sm:$0xff]  }
  0x61   :  { %2274 = vmatprep.subr.bf16.mxu1 %v4753_v33  ;;  %v339_v10 = vor.u32 %v5622_v15, %v5633_v23  ;;  %v4772_v33 = vld [vmem:[%s6757_s1 + $0x540] ss:$24 sps:$4 sm:$0xff]   ;;  %v6004_v23 = vld [vmem:[%s6758_s0 + $0x70] sm:$0xff]  }
  0x62   :  { %1895 = vmatmul.mubr.bf16.gmra.mrb[16].mxu0 %v5326_v38  ;;  %v4859_v15 = vld [vmem:[%s6757_s1 + $0x280] ss:$24 sps:$4 sm:$0xff]  }
  0x63   :  { %2194 = vmatmul.mubr.bf16.vlgmr.msra.gmra.mrb[32].mxu1 %v5154_v29  ;;  %1952 = vmatpush1.bf16.msra.mxu0 %v4748_v35  ;;  %v4762_v29 = vld [vmem:[%s6757_s1 + $0x4e4] ss:$24 sps:$4 sm:$0xff]   ;;  %v4775_v35 = vld [vmem:[%s6757_s1 + $0x3c8] ss:$24 sps:$4 sm:$0xff]  }
  0x64   :  { %2275 = vmatpush1.bf16.msra.mxu1 %v4751_v47  ;;  %1953 = vmatprep.subr.bf16.mxu0 %v4756_v43  ;;  %v4778_v47 = vld [vmem:[%s6757_s1 + $0x570] ss:$24 sps:$4 sm:$0xff]  }
  0x65   :  { %2276 = vmatprep.subr.bf16.mxu1 %v4759_v53  ;;  %1904 = vmatprep.mubr.bf16.mxu0 %v5596_v55  ;;  %v4781_v43 = vld [vmem:[%s6757_s1 + $0x3f8] ss:$24 sps:$4 sm:$0xff]   ;;  %v4786_v53 = vld [vmem:[%s6757_s1 + $0x5a4] ss:$24 sps:$4 sm:$0xff]  }
  0x66   :  { %2203 = vmatprep.mubr.bf16.mxu1 %v5395_v14 }
  0x67   :  { %1954 = vmatpush1.bf16.msra.mxu0 %v4754_v36  ;;  %v4784_v36 = vld [vmem:[%s6757_s1 + $0x5a0] ss:$24 sps:$4 sm:$0xff]  }
  0x68   :  { %2277 = vmatpush1.bf16.msra.mxu1 %v4757_v61  ;;  %1955 = vmatprep.subr.bf16.mxu0 %v4762_v29  ;;  %v4792_v61 = vld [vmem:[%s6757_s1 + $0x5d4] ss:$24 sps:$4 sm:$0xff]  }
  0x69   :  { %2278 = vmatprep.subr.bf16.mxu1 %v4765_v62  ;;  %v4795_v29 = vld [vmem:[%s6757_s1 + $0x45c] ss:$24 sps:$4 sm:$0xff]   ;;  %v4790_v62 = vld [vmem:[%s6757_s1 + $0x5d0] ss:$24 sps:$4 sm:$0xff]  }
  0x6a   :  { %1905 = vmatmul.mubr.bf16.gmra.mrb[20].mxu0 %v5374_v3 }
  0x6b   :  { %2204 = vmatmul.mubr.bf16.gmra.mrb[36].mxu1 %v5192_v50  ;;  %1956 = vmatpush1.bf16.msra.mxu0 %v4760_v9  ;;  %v4774_v50 = vld [vmem:[%s6757_s1 + $0x544] ss:$24 sps:$4 sm:$0xff]  }
  0x6c   :  { %2279 = vmatpush1.bf16.msra.mxu1 %v4763_v18  ;;  %1957 = vmatprep.subr.bf16.mxu0 %v4768_v58  ;;  %v5707_v9 = vld [vmem:[%s6758_s0] sm:$0xff]   ;;  %v4801_v58 = vld [vmem:[%s6757_s1 + $0x14] ss:$24 sps:$4 sm:$0xff]  }
  0x6d   :  { %2280 = vmatprep.subr.bf16.mxu1 %v4771_v39  ;;  %1914 = vmatprep.mubr.bf16.mxu0 %v5641_v54  ;;  %v236_v11 = vrot.slane %v5707_v9, 1  ;;  %v4798_v18 = vld [vmem:[%s6757_s1 + $0x48c] ss:$24 sps:$4 sm:$0xff]   ;;  %v4796_v39 = vld [vmem:[%s6757_s1 + $0x488] ss:$24 sps:$4 sm:$0xff]  }
  0x6e   :  { %2213 = vmatprep.mubr.bf16.mxu1 %v5450_v41 }
  0x6f   :  { %1958 = vmatpush1.bf16.msra.mxu0 %v4766_v45 }
  0x70   :  { %2281 = vmatpush1.bf16.msra.mxu1 %v4769_v25  ;;  %1959 = vmatprep.subr.bf16.mxu0 %v4774_v50  ;;  %v4799_v25 = vld [vmem:[%s6757_s1 + $0x10] ss:$24 sps:$4 sm:$0xff]   ;;  %v4804_v50 = vld [vmem:[%s6757_s1 + $0x4bc] ss:$24 sps:$4 sm:$0xff]  }
  0x71   :  { %2282 = vmatprep.subr.bf16.mxu1 %v4777_v32  ;;  %v4807_v32 = vld [vmem:[%s6757_s1 + $0x44] ss:$24 sps:$4 sm:$0xff]  }
  0x72   :  { %1915 = vmatmul.mubr.bf16.gmra.mrb[24].mxu0 %v5418_v27 }
  0x73   :  { %2214 = vmatmul.mubr.bf16.gmra.mrb[40].mxu1 %v5240_v6  ;;  %1960 = vmatpush1.bf16.msra.mxu0 %v4772_v33  ;;  %v4789_v6 = vld [vmem:[%s6757_s1 + $0x42c] ss:$24 sps:$4 sm:$0xff]   ;;  %v4802_v33 = vld [vmem:[%s6757_s1 + $0x4b8] ss:$24 sps:$4 sm:$0xff]  }
  0x74   :  { %2283 = vmatpush1.bf16.msra.mxu1 %v4775_v35  ;;  %1961 = vmatprep.subr.bf16.mxu0 %v4780_v42  ;;  %v4805_v35 = vld [vmem:[%s6757_s1 + $0x40] ss:$24 sps:$4 sm:$0xff]   ;;  %v5747_v42 = vld [vmem:[%s6758_s0 + $0x10] sm:$0xff]  }
  0x75   :  { %2284 = vmatprep.subr.bf16.mxu1 %v4783_v44  ;;  %1924 = vmatprep.mubr.bf16.mxu0 %v5502_v24  ;;  %v239_v44 = vrot.slane %v5747_v42, 1 }
  0x76   :  { %2223 = vmatprep.mubr.bf16.mxu1 %v5510_v26 }
  0x77   :  { %1962 = vmatpush1.bf16.msra.mxu0 %v4778_v47 }
  0x78   :  { %2285 = vmatpush1.bf16.msra.mxu1 %v4781_v43  ;;  %1963 = vmatprep.subr.bf16.mxu0 %v4786_v53  ;;  %v4810_v43 = vld [vmem:[%s6757_s1 + $0x4ec] ss:$24 sps:$4 sm:$0xff]  }
  0x79   :  { %2286 = vmatprep.subr.bf16.mxu1 %v4789_v6  ;;  %v4813_v53 = vld [vmem:[%s6757_s1 + $0x74] ss:$24 sps:$4 sm:$0xff]   ;;  %v4808_v6 = vld [vmem:[%s6757_s1 + $0x4e8] ss:$24 sps:$4 sm:$0xff]  }
  0x7a   :  { %1925 = vmatmul.mubr.bf16.gmra.mrb[28].mxu0 %v5445_v40 }
  0x7b   :  { %2224 = vmatmul.mubr.bf16.gmra.mrb[44].mxu1 %v5278_v19  ;;  %1964 = vmatpush1.bf16.msra.mxu0 %v4784_v36  ;;  %v5013_v19 = vld [vmem:[%s6758_s0 + $0x8] ss:$0 sps:$4 sm:$0xff]  }
  0x7c   :  { %2287 = vmatpush1.bf16.msra.mxu1 %v4787_v59  ;;  %v237_v13 = vrot.slane %v5013_v19, 1  ;;  %1965 = vmatprep.subr.bf16.mxu0 %v4792_v61  ;;  %v4811_v59 = vld [vmem:[%s6757_s1 + $0x70] ss:$24 sps:$4 sm:$0xff]   ;;  %v4816_v61 = vld [vmem:[%s6757_s1 + $0x51c] ss:$24 sps:$4 sm:$0xff]  }
  0x7d   :  { %2288 = vmatprep.subr.bf16.mxu1 %v4795_v29  ;;  %1967 = vmatprep.mubr.bf16.mxu0 %v5257_v12  ;;  %v4819_v29 = vld [vmem:[%s6757_s1 + $0xa4] ss:$24 sps:$4 sm:$0xff]  }
  0x7e   :  { %2233 = vmatprep.mubr.bf16.mxu1 %v5553_v22  ;;  %v5725_v45 = vsel %vm235_vm3, %v236_v11, %v237_v13  ;;  %v5787_v11 = vld [vmem:[%s6758_s0 + $0x20] sm:$0xff]   ;;  %v5017_v13 = vld [vmem:[%s6758_s0 + $0x28] ss:$0 sps:$4 sm:$0xff]  }
  0x7f   :  { %1966 = vmatpush1.bf16.msra.mxu0 %v4790_v62  ;;  %v4814_v62 = vld [vmem:[%s6757_s1 + $0x518] ss:$24 sps:$4 sm:$0xff]   ;;  %v242_v19 = vrot.slane %v5787_v11, 1 }
  0x80   :  { %2289 = vmatpush1.bf16.msra.mxu1 %v4793_v63  ;;  %2500 = vmatprep.subr.bf16.mxu0 %v4801_v58  ;;  %v4817_v63 = vld [vmem:[%s6757_s1 + $0xa0] ss:$24 sps:$4 sm:$0xff]   ;;  %v4822_v58 = vld [vmem:[%s6757_s1 + $0x54c] ss:$24 sps:$4 sm:$0xff]  }
  0x81   :  { %2290 = vmatprep.subr.bf16.mxu1 %v4798_v18  ;;  %v243_v18 = vrot.slane %v5017_v13, 1  ;;  %v4835_v13 = vld [vmem:[%s6757_s1 + $0x130] ss:$24 sps:$4 sm:$0xff]  }
  0x82   :  { %1968 = vmatmul.mubr.bf16.vlgmr.msra.gmra.mrb[0].mxu0 %v5725_v45 }
  0x83   :  { %2234 = vmatmul.mubr.bf16.gmra.mrb[48].mxu1 %v5326_v38  ;;  %2501 = vmatpush1.bf16.msra.mxu0 %v4799_v25  ;;  %v5015_v38 = vld [vmem:[%s6758_s0 + $0x18] ss:$0 sps:$4 sm:$0xff]   ;;  %v4820_v25 = vld [vmem:[%s6757_s1 + $0x548] ss:$24 sps:$4 sm:$0xff]  }
  0x84   :  { %2291 = vmatpush1.bf16.msra.mxu1 %v4796_v39  ;;  %v240_v47 = vrot.slane %v5015_v38, 1  ;;  %2502 = vmatprep.subr.bf16.mxu0 %v4807_v32  ;;  %v4825_v39 = vld [vmem:[%s6757_s1 + $0xd4] ss:$24 sps:$4 sm:$0xff]   ;;  %v4823_v32 = vld [vmem:[%s6757_s1 + $0xd0] ss:$24 sps:$4 sm:$0xff]  }
  0x85   :  { %2292 = vmatprep.subr.bf16.mxu1 %v4804_v50  ;;  %1977 = vmatprep.mubr.bf16.mxu0 %v5382_v8  ;;  %v5805_v50 = vsel %vm235_vm3, %v242_v19, %v243_v18  ;;  %v4829_v38 = vld [vmem:[%s6757_s1 + $0x100] ss:$24 sps:$4 sm:$0xff]   ;;  %v315_v18 = vrot.slane %v194_v57, 2 }
  0x86   :  { %2243 = vmatprep.mubr.bf16.mxu1 %v5596_v55  ;;  %v5765_v36 = vsel %vm235_vm3, %v239_v44, %v240_v47  ;;  %v4826_v44 = vld [vmem:[%s6757_s1 + $0x578] ss:$24 sps:$4 sm:$0xff]   ;;  %v5874_v57 = vld [vmem:[%s6758_s0 + $0x40] sm:$0xff]  }
  0x87   :  { %2503 = vmatpush1.bf16.msra.mxu0 %v4805_v35  ;;  %v4831_v35 = vld [vmem:[%s6757_s1 + $0x104] ss:$24 sps:$4 sm:$0xff]   ;;  %v5827_v47 = vld [vmem:[%s6758_s0 + $0x30] sm:$0xff]  }
  0x88   :  { %2293 = vmatpush1.bf16.msra.mxu1 %v4802_v33  ;;  %2504 = vmatprep.subr.bf16.mxu0 %v4813_v53  ;;  %v4828_v33 = vld [vmem:[%s6757_s1 + $0x57c] ss:$24 sps:$4 sm:$0xff]   ;;  %v5019_v53 = vld [vmem:[%s6758_s0 + $0x38] ss:$0 sps:$4 sm:$0xff]  }
  0x89   :  { %2294 = vmatprep.subr.bf16.mxu1 %v4810_v43  ;;  %v245_v43 = vrot.slane %v5827_v47, 1 }
  0x8a   :  { %1978 = vmatmul.mubr.bf16.gmra.mrb[4].mxu0 %v5765_v36 }
  0x8b   :  { %2244 = vmatmul.mubr.bf16.gmra.mrb[52].mxu1 %v5374_v3  ;;  %2505 = vmatpush1.bf16.msra.mxu0 %v4811_v59  ;;  %v4834_v59 = vld [vmem:[%s6757_s1 + $0x5ac] ss:$24 sps:$4 sm:$0xff]   ;;  %v4838_v3 = vld [vmem:[%s6757_s1 + $0x5d8] ss:$24 sps:$4 sm:$0xff]  }
  0x8c   :  { %2295 = vmatpush1.bf16.msra.mxu1 %v4808_v6  ;;  %2506 = vmatprep.subr.bf16.mxu0 %v4819_v29  ;;  %v246_v6 = vrot.slane %v5019_v53, 1  ;;  %v317_v29 = vshrl.u32 %v5379_v4, 16  ;;  %v4841_v4 = vld [vmem:[%s6757_s1 + $0x160] ss:$24 sps:$4 sm:$0xff]   ;;  %v4870_v53 = vld [vmem:[%s6757_s1 + $0x60c] ss:$24 sps:$4 sm:$0xff]  }
  0x8d   :  { %2296 = vmatprep.subr.bf16.mxu1 %v4816_v61  ;;  %1987 = vmatprep.mubr.bf16.mxu0 %v5522_v30  ;;  %v4837_v61 = vld [vmem:[%s6757_s1 + $0x134] ss:$24 sps:$4 sm:$0xff]  }
  0x8e   :  { %2253 = vmatprep.mubr.bf16.mxu1 %v5641_v54  ;;  %v5848_v19 = vsel %vm235_vm3, %v245_v43, %v246_v6  ;;  %v326_v43 = vshrl.u32 %v5423_v28, 16  ;;  %v5922_v28 = vld [vmem:[%s6758_s0 + $0x50] sm:$0xff]  }
  0x8f   :  { %2507 = vmatpush1.bf16.msra.mxu0 %v4817_v63  ;;  %v314_v63 = vrot.slane %v192_v16, 1  ;;  %v4840_v16 = vld [vmem:[%s6757_s1 + $0x5dc] ss:$24 sps:$4 sm:$0xff]  }
  0x90   :  { %2297 = vmatpush1.bf16.msra.mxu1 %v4814_v62  ;;  %2508 = vmatprep.subr.bf16.mxu0 %v4825_v39  ;;  %v4832_v62 = vld [vmem:[%s6757_s1 + $0x5a8] ss:$24 sps:$4 sm:$0xff]   ;;  %v4843_v39 = vld [vmem:[%s6757_s1 + $0x164] ss:$24 sps:$4 sm:$0xff]  }
  0x91   :  { %2298 = vmatprep.subr.bf16.mxu1 %v4822_v58  ;;  %v320_v58 = vrot.slane %v199_v7, 2  ;;  %v248_v7 = vrot.slane %v5874_v57, 1 }
  0x92   :  { %1988 = vmatmul.mubr.bf16.gmra.mrb[8].mxu0 %v5805_v50 }
  0x93   :  { %2254 = vmatmul.mubr.bf16.gmra.mrb[56].mxu1 %v5418_v27  ;;  %2509 = vmatpush1.bf16.msra.mxu0 %v4823_v32  ;;  %v5021_v32 = vld [vmem:[%s6758_s0 + $0x48] ss:$0 sps:$4 sm:$0xff]  }
  0x94   :  { %2299 = vmatpush1.bf16.msra.mxu1 %v4820_v25  ;;  %2510 = vmatprep.subr.bf16.mxu0 %v4831_v35  ;;  %v319_v25 = vrot.slane %v317_v29, 1  ;;  %v4846_v35 = vld [vmem:[%s6757_s1 + $0x194] ss:$24 sps:$4 sm:$0xff]   ;;  %v4849_v29 = vld [vmem:[%s6757_s1 + $0x1c4] ss:$24 sps:$4 sm:$0xff]  }
  0x95   :  { %2300 = vmatprep.subr.bf16.mxu1 %v4828_v33  ;;  %1997 = vmatprep.mubr.bf16.mxu0 %v5545_v17  ;;  %v249_v33 = vrot.slane %v5021_v32, 1 }
  0x96   :  { %2263 = vmatprep.mubr.bf16.mxu1 %v5502_v24 }
  0x97   :  { %2511 = vmatpush1.bf16.msra.mxu0 %v4829_v38  ;;  %v321_v38 = vor.u32 %v320_v58, %v319_v25  ;;  %v5890_v6 = vsel %vm235_vm3, %v248_v7, %v249_v33  ;;  %v4876_v58 = vld [vmem:[%s6757_s1 + $0x63c] ss:$24 sps:$4 sm:$0xff]   ;;  %v4874_v7 = vld [vmem:[%s6757_s1 + $0x638] ss:$24 sps:$4 sm:$0xff]  }
  0x98   :  { %2301 = vmatpush1.bf16.msra.mxu1 %v4826_v44  ;;  %2512 = vmatprep.subr.bf16.mxu0 %v4837_v61  ;;  %v316_v44 = vor.u32 %v315_v18, %v314_v63  ;;  %v323_v61 = vrot.slane %v204_v56, 1  ;;  %v324_v63 = vrot.slane %v206_v46, 2  ;;  %v329_v18 = vrot.slane %v211_v21, 2  ;;  %v4868_v56 = vld [vmem:[%s6757_s1 + $0x608] ss:$24 sps:$4 sm:$0xff]  }
  0x99   :  { %2302 = vmatprep.subr.bf16.mxu1 %v4834_v59  ;;  %v4844_v59 = vld [vmem:[%s6757_s1 + $0x190] ss:$24 sps:$4 sm:$0xff]   ;;  %v4847_v46 = vld [vmem:[%s6757_s1 + $0x1c0] ss:$24 sps:$4 sm:$0xff]   ;;  %v251_v21 = vrot.slane %v5922_v28, 1 }
  0x9a   :  { %1998 = vmatmul.mubr.bf16.gmra.mrb[12].mxu0 %v5848_v19  ;;  %v4852_v25 = vld [vmem:[%s6757_s1 + $0x1f4] ss:$24 sps:$4 sm:$0xff]   ;;  %v4850_v33 = vld [vmem:[%s6757_s1 + $0x1f0] ss:$24 sps:$4 sm:$0xff]  }
  0x9b   :  { %2264 = vmatmul.mubr.bf16.gmra.mrb[60].mxu1 %v5445_v40  ;;  %2513 = vmatpush1.bf16.msra.mxu0 %v4835_v13  ;;  %v328_v13 = vrot.slane %v326_v43, 1  ;;  %v333_v43 = vrot.slane %v218_v51, 2  ;;  %v4853_v40 = vld [vmem:[%s6757_s1 + $0x220] ss:$24 sps:$4 sm:$0xff]   ;;  %v5024_v51 = vld [vmem:[%s6758_s0 + $0x68] ss:$0 sps:$4 sm:$0xff]  }
  0x9c   :  { %2303 = vmatpush1.bf16.msra.mxu1 %v4832_v62  ;;  %2514 = vmatprep.subr.bf16.mxu0 %v4843_v39  ;;  %v5901_v62 = vsel %vm268_vm2, %v316_v44, %v321_v38  ;;  %v4855_v44 = vld [vmem:[%s6757_s1 + $0x224] ss:$24 sps:$4 sm:$0xff]  }
  0x9d   :  { %2304 = vmatprep.subr.bf16.mxu1 %v4840_v16  ;;  %2007 = vmatprep.mubr.bf16.mxu0 %v5570_v34  ;;  %v5023_v16 = vld [vmem:[%s6758_s0 + $0x58] ss:$0 sps:$4 sm:$0xff]  }
  0x9e   :  { %2306 = vmatprep.mubr.bf16.mxu1 %v5257_v12  ;;  %v252_v39 = vrot.slane %v5023_v16, 1  ;;  %v5026_v16 = vld [vmem:[%s6758_s0 + $0x78] ss:$0 sps:$4 sm:$0xff]  }
  0x9f   :  { %2515 = vmatpush1.bf16.msra.mxu0 %v4841_v4  ;;  %v330_v4 = vor.u32 %v329_v18, %v328_v13  ;;  %v4856_v18 = vld [vmem:[%s6757_s1 + $0x250] ss:$24 sps:$4 sm:$0xff]  }
  0xa0   :  { %2305 = vmatpush1.bf16.msra.mxu1 %v4838_v3  ;;  %2516 = vmatprep.subr.bf16.mxu0 %v4846_v35  ;;  %v325_v3 = vor.u32 %v324_v63, %v323_v61  ;;  %v5936_v32 = vsel %vm235_vm3, %v251_v21, %v252_v39  ;;  %v332_v35 = vrot.slane %v216_v48, 1  ;;  %v254_v48 = vrot.slane %v5418_v27, 1  ;;  %v4888_v27 = vld [vmem:[%s6757_s1 + $0x69c] ss:$24 sps:$4 sm:$0xff]   ;;  %v4894_v21 = vld [vmem:[%s6757_s1 + $0x6cc] ss:$24 sps:$4 sm:$0xff]  }
  0xa1   :  { %2387 = vmatprep.subr.bf16.mxu1 %v4870_v53  ;;  %v4882_v53 = vld [vmem:[%s6757_s1 + $0x66c] ss:$24 sps:$4 sm:$0xff]   ;;  %v255_v61 = vrot.slane %v5024_v51, 1  ;;  %v258_v39 = vrot.slane %v5026_v16, 1  ;;  %v4912_v51 = vld [vmem:[%s6757_s1 + $0x75c] ss:$24 sps:$4 sm:$0xff]  }
  0xa2   :  { %2008 = vmatmul.mubr.bf16.gmra.mrb[16].mxu0 %v5890_v6  ;;  %v5947_v38 = vsel %vm268_vm2, %v325_v3, %v330_v4  ;;  %v334_v63 = vor.u32 %v333_v43, %v332_v35  ;;  %v4892_v3 = vld [vmem:[%s6757_s1 + $0x6c8] ss:$24 sps:$4 sm:$0xff]   ;;  %v4900_v35 = vld [vmem:[%s6757_s1 + $0x6fc] ss:$24 sps:$4 sm:$0xff]  }
  0xa3   :  { %2307 = vmatmul.mubr.bf16.vlgmr.msra.gmra.mrb[32].mxu1 %v5725_v45  ;;  %2517 = vmatpush1.bf16.msra.mxu0 %v4844_v59  ;;  %v4880_v59 = vld [vmem:[%s6757_s1 + $0x668] ss:$24 sps:$4 sm:$0xff]   ;;  %v5975_v13 = vsel %vm235_vm3, %v254_v48, %v255_v61  ;;  %v4873_v48 = vld [vmem:[%s6757_s1 + $0x314] ss:$24 sps:$4 sm:$0xff]  }
  0xa4   :  { %2017 = vmatprep.mubr.bf16.mxu0 %v5901_v62  ;;  %2518 = vmatprep.subr.bf16.mxu0 %v4849_v29  ;;  %v4858_v29 = vld [vmem:[%s6757_s1 + $0x254] ss:$24 sps:$4 sm:$0xff]   ;;  %v4865_v43 = vld [vmem:[%s6757_s1 + $0x2e0] ss:$24 sps:$4 sm:$0xff]  }
  0xa5   :  { %2316 = vmatprep.mubr.bf16.mxu1 %v5382_v8  ;;  %2388 = vmatpush1.bf16.msra.mxu1 %v4868_v56  ;;  %v4861_v56 = vld [vmem:[%s6757_s1 + $0x284] ss:$24 sps:$4 sm:$0xff]   ;;  %v4877_v61 = vld [vmem:[%s6757_s1 + $0x340] ss:$24 sps:$4 sm:$0xff]   ;;  %v4924_v16 = vld [vmem:[%s6757_s1 + $0x4f4] ss:$24 sps:$4 sm:$0xff]  }
  0xa6   :  { %2389 = vmatprep.subr.bf16.mxu1 %v4876_v58  ;;  %v5987_v58 = vsel %vm268_vm2, %v334_v63, %v339_v10  ;;  %v257_v10 = vrot.slane %v6004_v23, 1  ;;  %v4889_v63 = vld [vmem:[%s6757_s1 + $0x3a0] ss:$24 sps:$4 sm:$0xff]  }
  0xa7   :  { %2519 = vmatpush1.bf16.msra.mxu0 %v4847_v46  ;;  %v4886_v46 = vld [vmem:[%s6757_s1 + $0x698] ss:$24 sps:$4 sm:$0xff]  }
  0xa8   :  { %2520 = vmatprep.subr.bf16.mxu0 %v4852_v25  ;;  %v4864_v25 = vld [vmem:[%s6757_s1 + $0x2b4] ss:$24 sps:$4 sm:$0xff]   ;;  %v6018_v4 = vsel %vm235_vm3, %v257_v10, %v258_v39  ;;  %v4916_v10 = vld [vmem:[%s6757_s1 + $0x490] ss:$24 sps:$4 sm:$0xff]  }
  0xa9   :  { %2390 = vmatpush1.bf16.msra.mxu1 %v4874_v7  ;;  %v4862_v7 = vld [vmem:[%s6757_s1 + $0x2b0] ss:$24 sps:$4 sm:$0xff]  }
  0xaa   :  { %2018 = vmatmul.mubr.bf16.gmra.mrb[20].mxu0 %v5936_v32  ;;  %2391 = vmatprep.subr.bf16.mxu1 %v4882_v53  ;;  %v4906_v53 = vld [vmem:[%s6757_s1 + $0x72c] ss:$24 sps:$4 sm:$0xff]   ;;  %v4922_v39 = vld [vmem:[%s6757_s1 + $0x4f0] ss:$24 sps:$4 sm:$0xff]  }
  0xab   :  { %2317 = vmatmul.mubr.bf16.gmra.mrb[36].mxu1 %v5765_v36  ;;  %2521 = vmatpush1.bf16.msra.mxu0 %v4850_v33  ;;  %v4867_v33 = vld [vmem:[%s6757_s1 + $0x2e4] ss:$24 sps:$4 sm:$0xff]  }
  0xac   :  { %2027 = vmatprep.mubr.bf16.mxu0 %v5947_v38  ;;  %2522 = vmatprep.subr.bf16.mxu0 %v4855_v44  ;;  %v4898_v44 = vld [vmem:[%s6757_s1 + $0x6f8] ss:$24 sps:$4 sm:$0xff]  }
  0xad   :  { %2326 = vmatprep.mubr.bf16.mxu1 %v5522_v30  ;;  %2392 = vmatpush1.bf16.msra.mxu1 %v4880_v59  ;;  %v4871_v59 = vld [vmem:[%s6757_s1 + $0x310] ss:$24 sps:$4 sm:$0xff]  }
  0xae   :  { %2393 = vmatprep.subr.bf16.mxu1 %v4888_v27  ;;  %v4885_v27 = vld [vmem:[%s6757_s1 + $0x374] ss:$24 sps:$4 sm:$0xff]  }
  0xaf   :  { %2523 = vmatpush1.bf16.msra.mxu0 %v4853_v40  ;;  %v4879_v40 = vld [vmem:[%s6757_s1 + $0x344] ss:$24 sps:$4 sm:$0xff]  }
  0xb0   :  { %2524 = vmatprep.subr.bf16.mxu0 %v4858_v29  ;;  %v4883_v29 = vld [vmem:[%s6757_s1 + $0x370] ss:$24 sps:$4 sm:$0xff]  }
  0xb1   :  { %2394 = vmatpush1.bf16.msra.mxu1 %v4886_v46  ;;  %v4909_v46 = vld [vmem:[%s6757_s1 + $0x434] ss:$24 sps:$4 sm:$0xff]  }
  0xb2   :  { %2028 = vmatmul.mubr.bf16.gmra.mrb[24].mxu0 %v5975_v13  ;;  %2395 = vmatprep.subr.bf16.mxu1 %v4894_v21  ;;  %v4907_v21 = vld [vmem:[%s6757_s1 + $0x430] ss:$24 sps:$4 sm:$0xff]  }
  0xb3   :  { %2327 = vmatmul.mubr.bf16.gmra.mrb[40].mxu1 %v5805_v50  ;;  %2525 = vmatpush1.bf16.msra.mxu0 %v4856_v18  ;;  %v4897_v18 = vld [vmem:[%s6757_s1 + $0x3d4] ss:$24 sps:$4 sm:$0xff]  }
  0xb4   :  { %2037 = vmatprep.mubr.bf16.mxu0 %v5987_v58  ;;  %2526 = vmatprep.subr.bf16.mxu0 %v4861_v56  ;;  %v4895_v56 = vld [vmem:[%s6757_s1 + $0x3d0] ss:$24 sps:$4 sm:$0xff]  }
  0xb5   :  { %2336 = vmatprep.mubr.bf16.mxu1 %v5545_v17  ;;  %2396 = vmatpush1.bf16.msra.mxu1 %v4892_v3  ;;  %v4928_v3 = vld [vmem:[%s6757_s1 + $0x550] ss:$24 sps:$4 sm:$0xff]  }
  0xb6   :  { %2397 = vmatprep.subr.bf16.mxu1 %v4900_v35 }
  0xb7   :  { %2527 = vmatpush1.bf16.msra.mxu0 %v4859_v15  ;;  %v4918_v15 = vld [vmem:[%s6757_s1 + $0x494] ss:$24 sps:$4 sm:$0xff]  }
  0xb8   :  { %2528 = vmatprep.subr.bf16.mxu0 %v4864_v25  ;;  %v4930_v25 = vld [vmem:[%s6757_s1 + $0x554] ss:$24 sps:$4 sm:$0xff]  }
  0xb9   :  { %2398 = vmatpush1.bf16.msra.mxu1 %v4898_v44 }
  0xba   :  { %2038 = vmatmul.mubr.bf16.gmra.mrb[28].mxu0 %v6018_v4  ;;  %2399 = vmatprep.subr.bf16.mxu1 %v4906_v53 }
  0xbb   :  { %2337 = vmatmul.mubr.bf16.gmra.mrb[44].mxu1 %v5848_v19  ;;  %2529 = vmatpush1.bf16.msra.mxu0 %v4862_v7  ;;  %v4931_v7 = vld [vmem:[%s6757_s1 + $0x580] ss:$24 sps:$4 sm:$0xff]  }
  0xbc   :  { %2346 = vmatprep.mubr.bf16.mxu1 %v5570_v34  ;;  %2530 = vmatprep.subr.bf16.mxu0 %v4867_v33  ;;  %v4936_v33 = vld [vmem:[%s6757_s1 + $0x5b4] ss:$24 sps:$4 sm:$0xff]  }
  0xbd   :  { %2532 = vmatprep.mubr.bf16.mxu0 %v5200_v52  ;;  %v4904_v52 = vld [vmem:[%s6757_s1 + $0x728] ss:$24 sps:$4 sm:$0xff]  }
  0xbe   :  { %2400 = vmatpush1.bf16.msra.mxu1 %v4904_v52 }
  0xbf   :  { %2531 = vmatpush1.bf16.msra.mxu0 %v4865_v43  ;;  %2401 = vmatprep.subr.bf16.mxu1 %v4912_v51  ;;  %v4934_v43 = vld [vmem:[%s6757_s1 + $0x5b0] ss:$24 sps:$4 sm:$0xff]  }
  0xc0   :  { %2613 = vmatprep.subr.bf16.mxu0 %v4873_v48 }
  0xc2   :  { %2533 = vmatmul.mubr.bf16.vlgmr.msra.gmra.mrb[32].mxu0 %v5707_v9  ;;  %v4910_v9 = vld [vmem:[%s6757_s1 + $0x758] ss:$24 sps:$4 sm:$0xff]  }
  0xc3   :  { %2347 = vmatmul.mubr.bf16.gmra.mrb[48].mxu1 %v5890_v6  ;;  %2614 = vmatpush1.bf16.msra.mxu0 %v4871_v59  ;;  %v4937_v59 = vld [vmem:[%s6757_s1 + $0x5e0] ss:$24 sps:$4 sm:$0xff]  }
  0xc4   :  { %2356 = vmatprep.mubr.bf16.mxu1 %v5901_v62  ;;  %2615 = vmatprep.subr.bf16.mxu0 %v4879_v40  ;;  %v4942_v40 = vld [vmem:[%s6757_s1 + $0x614] ss:$24 sps:$4 sm:$0xff]  }
  0xc5   :  { %2542 = vmatprep.mubr.bf16.mxu0 %v5395_v14  ;;  %v4891_v14 = vld [vmem:[%s6757_s1 + $0x3a4] ss:$24 sps:$4 sm:$0xff]   ;;  %2402 = vmatpush1.bf16.msra.mxu1 %v4910_v9  ;;  %v4943_v9 = vld [vmem:[%s6757_s1 + $0x640] ss:$24 sps:$4 sm:$0xff]  }
  0xc7   :  { %2616 = vmatpush1.bf16.msra.mxu0 %v4877_v61 }
  0xc8   :  { %2617 = vmatprep.subr.bf16.mxu0 %v4885_v27 }
  0xca   :  { %2543 = vmatmul.mubr.bf16.gmra.mrb[36].mxu0 %v5747_v42  ;;  %v4903_v42 = vld [vmem:[%s6757_s1 + $0x404] ss:$24 sps:$4 sm:$0xff]  }
  0xcb   :  { %2357 = vmatmul.mubr.bf16.gmra.mrb[52].mxu1 %v5936_v32  ;;  %2618 = vmatpush1.bf16.msra.mxu0 %v4883_v29  ;;  %v4948_v29 = vld [vmem:[%s6757_s1 + $0x674] ss:$24 sps:$4 sm:$0xff]  }
  0xcc   :  { %2366 = vmatprep.mubr.bf16.mxu1 %v5947_v38  ;;  %2619 = vmatprep.subr.bf16.mxu0 %v4891_v14 }
  0xcd   :  { %2552 = vmatprep.mubr.bf16.mxu0 %v5450_v41  ;;  %v4901_v41 = vld [vmem:[%s6757_s1 + $0x400] ss:$24 sps:$4 sm:$0xff]  }
  0xcf   :  { %2620 = vmatpush1.bf16.msra.mxu0 %v4889_v63 }
  0xd0   :  { %2621 = vmatprep.subr.bf16.mxu0 %v4897_v18  ;;  %v4946_v18 = vld [vmem:[%s6757_s1 + $0x670] ss:$24 sps:$4 sm:$0xff]  }
  0xd2   :  { %2553 = vmatmul.mubr.bf16.gmra.mrb[40].mxu0 %v5787_v11  ;;  %v4915_v11 = vld [vmem:[%s6757_s1 + $0x464] ss:$24 sps:$4 sm:$0xff]  }
  0xd3   :  { %2367 = vmatmul.mubr.bf16.gmra.mrb[56].mxu1 %v5975_v13  ;;  %2622 = vmatpush1.bf16.msra.mxu0 %v4895_v56 }
  0xd4   :  { %2376 = vmatprep.mubr.bf16.mxu1 %v5987_v58  ;;  %2623 = vmatprep.subr.bf16.mxu0 %v4903_v42  ;;  %v4949_v42 = vld [vmem:[%s6757_s1 + $0x6a0] ss:$24 sps:$4 sm:$0xff]  }
  0xd5   :  { %2562 = vmatprep.mubr.bf16.mxu0 %v5510_v26  ;;  %v4913_v26 = vld [vmem:[%s6757_s1 + $0x460] ss:$24 sps:$4 sm:$0xff]  }
  0xd7   :  { %2624 = vmatpush1.bf16.msra.mxu0 %v4901_v41  ;;  %v4954_v41 = vld [vmem:[%s6757_s1 + $0x6d4] ss:$24 sps:$4 sm:$0xff]  }
  0xd8   :  { %2625 = vmatprep.subr.bf16.mxu0 %v4909_v46  ;;  %v4964_v46 = vld [vmem:[%s6759_s4 + $0x40] sm:$0xff]  }
  0xd9   :  { %4328 = vmatprep.subr.bf16.mxu1 %v4964_v46 }
  0xda   :  { %2563 = vmatmul.mubr.bf16.gmra.mrb[44].mxu0 %v5827_v47  ;;  %v4921_v47 = vld [vmem:[%s6757_s1 + $0x4c4] ss:$24 sps:$4 sm:$0xff]  }
  0xdb   :  { %2377 = vmatmul.mubr.bf16.gmra.mrb[60].mxu1 %v6018_v4  ;;  %2626 = vmatpush1.bf16.msra.mxu0 %v4907_v21 }
  0xdc   :  { %2419 = vmatprep.mubr.bf16.mxu1 %v5029_v1  ;;  %2627 = vmatprep.subr.bf16.mxu0 %v4915_v11 }
  0xdd   :  { %2572 = vmatprep.mubr.bf16.mxu0 %v5553_v22  ;;  %v4919_v22 = vld [vmem:[%s6757_s1 + $0x4c0] ss:$24 sps:$4 sm:$0xff]  }
  0xdf   :  { %2628 = vmatpush1.bf16.msra.mxu0 %v4913_v26 }
  0xe0   :  { %2629 = vmatprep.subr.bf16.mxu0 %v4918_v15  ;;  %v4966_v15 = vld [vmem:[%s6759_s4 + $0x48] sm:$0xff]  }
  0xe2   :  { %2573 = vmatmul.mubr.bf16.gmra.mrb[48].mxu0 %v5874_v57  ;;  %v4927_v57 = vld [vmem:[%s6757_s1 + $0x524] ss:$24 sps:$4 sm:$0xff]  }
  0xe3   :  { %2420 = vmatmul.mubr.bf16.vlgmr.msra.gmra.mrb[32].mxu1 %v5187_v49  ;;  %2630 = vmatpush1.bf16.msra.mxu0 %v4916_v10  ;;  %v4957_v10 = vld [vmem:[%s6757_s1 + $0x704] ss:$24 sps:$4 sm:$0xff]  }
  0xe4   :  { %2429 = vmatprep.mubr.bf16.mxu1 %v5029_v1  ;;  %2631 = vmatprep.subr.bf16.mxu0 %v4921_v47 }
  0xe5   :  { %2582 = vmatprep.mubr.bf16.mxu0 %v5596_v55  ;;  %v4925_v55 = vld [vmem:[%s6757_s1 + $0x520] ss:$24 sps:$4 sm:$0xff]  }
  0xe7   :  { %2632 = vmatpush1.bf16.msra.mxu0 %v4919_v22  ;;  %v4967_v22 = vld [vmem:[%s6759_s4 + $0x8] sm:$0xff]  }
  0xe8   :  { %2633 = vmatprep.subr.bf16.mxu0 %v4924_v16  ;;  %v4955_v16 = vld [vmem:[%s6757_s1 + $0x700] ss:$24 sps:$4 sm:$0xff]  }
  0xea   :  { %2583 = vmatmul.mubr.bf16.gmra.mrb[52].mxu0 %v5922_v28  ;;  %v4933_v28 = vld [vmem:[%s6757_s1 + $0x584] ss:$24 sps:$4 sm:$0xff]  }
  0xeb   :  { %2430 = vmatmul.mubr.bf16.gmra.mrb[36].mxu1 %v5235_v5  ;;  %2634 = vmatpush1.bf16.msra.mxu0 %v4922_v39  ;;  %v4960_v39 = vld [vmem:[%s6757_s1 + $0x734] ss:$24 sps:$4 sm:$0xff]  }
  0xec   :  { %2439 = vmatprep.mubr.bf16.mxu1 %v5029_v1  ;;  %2635 = vmatprep.subr.bf16.mxu0 %v4927_v57  ;;  %v4968_v57 = vld [vmem:[%s6759_s4 + $0x50] sm:$0xff]  }
  0xed   :  { %2592 = vmatprep.mubr.bf16.mxu0 %v5641_v54  ;;  %v5027_v54 = vld [vmem:[%s6758_s0 + $0x60] sm:$0xff]  }
  0xef   :  { %2636 = vmatpush1.bf16.msra.mxu0 %v4925_v55 }
  0xf0   :  { %2637 = vmatprep.subr.bf16.mxu0 %v4930_v25 }
  0xf2   :  { %2593 = vmatmul.mubr.bf16.gmra.mrb[56].mxu0 %v5027_v54  ;;  %v4963_v54 = vld [vmem:[%s6757_s1 + $0x764] ss:$24 sps:$4 sm:$0xff]  }
  0xf3   :  { %2440 = vmatmul.mubr.bf16.gmra.mrb[40].mxu1 %v5281_v20  ;;  %2638 = vmatpush1.bf16.msra.mxu0 %v4928_v3 }
  0xf4   :  { %2449 = vmatprep.mubr.bf16.mxu1 %v5029_v1  ;;  %2639 = vmatprep.subr.bf16.mxu0 %v4933_v28  ;;  %v4970_v28 = vld [vmem:[%s6759_s4 + $0x58] sm:$0xff]  }
  0xf5   :  { %2602 = vmatprep.mubr.bf16.mxu0 %v5502_v24  ;;  %v4939_v24 = vld [vmem:[%s6757_s1 + $0x5e4] ss:$24 sps:$4 sm:$0xff]  }
  0xf6   :  { %v6168_v35 = vpop.f32.mrb[0].mxu1 }
  0xf7   :  { %v6170_v44 = vpop.f32.mrb[1].mxu1  ;;  %2640 = vmatpush1.bf16.msra.mxu0 %v4931_v7 }
  0xf8   :  { %v6175_v53 = vpop.f32.mrb[2].mxu1  ;;  %2641 = vmatprep.subr.bf16.mxu0 %v4936_v33  ;;  %v4971_v33 = vld [vmem:[%s6759_s4 + $0x18] sm:$0xff]  }
  0xf9   :  { %v6180_v48 = vpop.f32.mrb[3].mxu1 }
  0xfa   :  { %2603 = vmatmul.mubr.bf16.gmra.mrb[60].mxu0 %v6004_v23  ;;  %v4940_v23 = vld [vmem:[%s6757_s1 + $0x610] ss:$24 sps:$4 sm:$0xff]  }
  0xfb   :  { %2450 = vmatmul.mubr.bf16.gmra.mrb[44].mxu1 %v5321_v37  ;;  %2642 = vmatpush1.bf16.msra.mxu0 %v4934_v43  ;;  %v4961_v43 = vld [vmem:[%s6757_s1 + $0x760] ss:$24 sps:$4 sm:$0xff]  }
  0xfc   :  { %2459 = vmatprep.mubr.bf16.mxu1 %v5029_v1  ;;  %2643 = vmatprep.subr.bf16.mxu0 %v4939_v24  ;;  %v4972_v24 = vld [vmem:[%s6759_s4 + $0x60] sm:$0xff]  }
  0xfd   :  { %2645 = vmatprep.mubr.bf16.mxu0 %v5257_v12  ;;  %v4945_v12 = vld [vmem:[%s6757_s1 + $0x644] ss:$24 sps:$4 sm:$0xff]  }
  0xfe   :  { %v6192_v52 = vpop.f32.mrb[4].mxu1 }
  0xff   :  { %v6194_v51 = vpop.f32.mrb[5].mxu1  ;;  %2644 = vmatpush1.bf16.msra.mxu0 %v4937_v59  ;;  %v4973_v59 = vld [vmem:[%s6759_s4 + $0x20] sm:$0xff]  }
 0x100   :  { %v6199_v61 = vpop.f32.mrb[6].mxu1  ;;  %2726 = vmatprep.subr.bf16.mxu0 %v4942_v40 }
 0x101   :  { %v6204_v27 = vpop.f32.mrb[7].mxu1 }
 0x102   :  { %2646 = vmatmul.mubr.bf16.vlgmr.msra.gmra.mrb[32].mxu0 %v5725_v45 }
 0x103   :  { %2460 = vmatmul.mubr.bf16.gmra.mrb[48].mxu1 %v5369_v2  ;;  %2727 = vmatpush1.bf16.msra.mxu0 %v4940_v23 }
 0x104   :  { %2469 = vmatprep.mubr.bf16.mxu1 %v5029_v1  ;;  %2655 = vmatprep.mubr.bf16.mxu0 %v5382_v8  ;;  %v4951_v8 = vld [vmem:[%s6757_s1 + $0x6a4] ss:$24 sps:$4 sm:$0xff]  }
 0x105   :  { %2728 = vmatprep.subr.bf16.mxu0 %v4945_v12 }
 0x106   :  { %v6216_v14 = vpop.f32.mrb[8].mxu1 }
 0x107   :  { %v6218_v63 = vpop.f32.mrb[9].mxu1  ;;  %2729 = vmatpush1.bf16.msra.mxu0 %v4943_v9  ;;  %v4975_v9 = vld [vmem:[%s6759_s4 + $0x28] sm:$0xff]  }
 0x108   :  { %v6220_v45 = vpop.f32.mrb[10].mxu1  ;;  %2730 = vmatprep.subr.bf16.mxu0 %v4948_v29  ;;  %v4976_v29 = vld [vmem:[%s6759_s4 + $0x70] sm:$0xff]  }
 0x109   :  { %v6225_v56 = vpop.f32.mrb[11].mxu1 }
 0x10a   :  { %2656 = vmatmul.mubr.bf16.gmra.mrb[36].mxu0 %v5765_v36  ;;  %v4965_v36 = vld [vmem:[%s6759_s4] sm:$0xff]  }
 0x10b   :  { %2470 = vmatmul.mubr.bf16.gmra.mrb[52].mxu1 %v5427_v31  ;;  %2665 = vmatprep.mubr.bf16.mxu0 %v5522_v30  ;;  %v4952_v30 = vld [vmem:[%s6757_s1 + $0x6d0] ss:$24 sps:$4 sm:$0xff]  }
 0x10c   :  { %2479 = vmatprep.mubr.bf16.mxu1 %v5029_v1  ;;  %2731 = vmatpush1.bf16.msra.mxu0 %v4946_v18  ;;  %v4977_v18 = vld [vmem:[%s6759_s4 + $0x30] sm:$0xff]  }
 0x10d   :  { %2732 = vmatprep.subr.bf16.mxu0 %v4951_v8  ;;  %4329 = vmatpush3.bf16.msra.mxu1 %v4965_v36 }
 0x10e   :  { %v6246_v21 = vpop.f32.mrb[12].mxu1  ;;  %4330 = vmatprep.subr.bf16.mxu1 %v4966_v15 }
 0x10f   :  { %v6251_v11 = vpop.f32.mrb[13].mxu1 }
 0x110   :  { %v6253_v26 = vpop.f32.mrb[14].mxu1  ;;  %2733 = vmatpush1.bf16.msra.mxu0 %v4949_v42  ;;  %v4978_v42 = vld [vmem:[%s6759_s4 + $0x78] sm:$0xff]  }
 0x111   :  { %v6261_v47 = vpop.f32.mrb[15].mxu1  ;;  %2734 = vmatprep.subr.bf16.mxu0 %v4954_v41  ;;  %4331 = vmatpush3.bf16.msra.mxu1 %v4967_v22 }
 0x112   :  { %2666 = vmatmul.mubr.bf16.gmra.mrb[40].mxu0 %v5805_v50  ;;  %v4969_v50 = vld [vmem:[%s6759_s4 + $0x10] sm:$0xff]   ;;  %4332 = vmatprep.subr.bf16.mxu1 %v4968_v57 }
 0x113   :  { %2480 = vmatmul.mubr.bf16.gmra.mrb[56].mxu1 %v5481_v0  ;;  %2675 = vmatprep.mubr.bf16.mxu0 %v5545_v17  ;;  %v4958_v17 = vld [vmem:[%s6757_s1 + $0x730] ss:$24 sps:$4 sm:$0xff]  }
 0x114   :  { %2489 = vmatprep.mubr.bf16.mxu1 %v5029_v1  ;;  %2735 = vmatpush1.bf16.msra.mxu0 %v4952_v30 }
 0x115   :  { %2736 = vmatprep.subr.bf16.mxu0 %v4957_v10  ;;  %4333 = vmatpush3.bf16.msra.mxu1 %v4969_v50  ;;  %v5030_v50 = vmov -1e+30  }
 0x116   :  { %v6282_v55 = vpop.f32.mrb[16].mxu1  ;;  %4334 = vmatprep.subr.bf16.mxu1 %v4970_v28 }
 0x117   :  { %v6287_v25 = vpop.f32.mrb[17].mxu1 }
 0x118   :  { %v6289_v3 = vpop.f32.mrb[18].mxu1  ;;  %2737 = vmatpush1.bf16.msra.mxu0 %v4955_v16 }
 0x119   :  { %v6297_v7 = vpop.f32.mrb[19].mxu1  ;;  %2738 = vmatprep.subr.bf16.mxu0 %v4960_v39  ;;  %4335 = vmatpush3.bf16.msra.mxu1 %v4971_v33 }
 0x11a   :  { %2676 = vmatmul.mubr.bf16.gmra.mrb[44].mxu0 %v5848_v19  ;;  %4336 = vmatprep.subr.bf16.mxu1 %v4972_v24 }
 0x11b   :  { %2490 = vmatmul.mubr.bf16.gmra.mrb[60].mxu1 %v5531_v60  ;;  %2685 = vmatprep.mubr.bf16.mxu0 %v5570_v34  ;;  %v4974_v34 = vld [vmem:[%s6759_s4 + $0x68] sm:$0xff]  }
 0x11c   :  { %2739 = vmatpush1.bf16.msra.mxu0 %v4958_v17 }
 0x11d   :  { %2740 = vmatprep.subr.bf16.mxu0 %v4963_v54  ;;  %4337 = vmatpush3.bf16.msra.mxu1 %v4973_v59 }
 0x11e   :  { %v6314_v40 = vpop.f32.mrb[20].mxu1  ;;  %4338 = vmatprep.subr.bf16.mxu1 %v4974_v34 }
 0x11f   :  { %v6316_v19 = vpop.f32.mrb[21].mxu1 }
 0x120   :  { %v6318_v23 = vpop.f32.mrb[22].mxu1  ;;  %2741 = vmatpush1.bf16.msra.mxu0 %v4961_v43 }
 0x121   :  { %v6323_v12 = vpop.f32.mrb[23].mxu1  ;;  %4339 = vmatpush3.bf16.msra.mxu1 %v4975_v9 }
 0x122   :  { %2686 = vmatmul.mubr.bf16.gmra.mrb[48].mxu0 %v5890_v6  ;;  %4340 = vmatprep.subr.bf16.mxu1 %v4976_v29 }
 0x123   :  { %2695 = vmatprep.mubr.bf16.mxu0 %v5901_v62  ;;  %v4979_v62 = vld [vmem:[%s6759_s4 + $0x38] sm:$0xff]  }
 0x125   :  { %4341 = vmatpush3.bf16.msra.mxu1 %v4977_v18 }
 0x126   :  { %v6336_v8 = vpop.f32.mrb[24].mxu1  ;;  %4342 = vmatprep.subr.bf16.mxu1 %v4978_v42 }
 0x127   :  { %v6341_v41 = vpop.f32.mrb[25].mxu1 }
 0x128   :  { %v6343_v6 = vpop.f32.mrb[26].mxu1 }
 0x129   :  { %v6345_v46 = vpop.f32.mrb[27].mxu1  ;;  %4343 = vmatpush3.bf16.msra.mxu1 %v4979_v62 }
 0x12a   :  { %2696 = vmatmul.mubr.bf16.gmra.mrb[52].mxu0 %v5936_v32  ;;  %v2839_v32 = vlaneseq }
 0x12b   :  { %2705 = vmatprep.mubr.bf16.mxu0 %v5947_v38 }
 0x12c   :  { %v6366_v38 = vshrl.u32 %v2839_v32, 7 }
 0x12e   :  { %v6352_v36 = vpop.f32.mrb[28].mxu1  ;;  %v2849_v22 = vsub.s32 0, %v6366_v38 }
 0x12f   :  { %v6354_v30 = vpop.f32.mrb[29].mxu1 }
 0x130   :  { %v6356_v15 = vpop.f32.mrb[30].mxu1 }
 0x131   :  { %v6358_v10 = vpop.f32.mrb[31].mxu1 }
 0x132   :  { %2706 = vmatmul.mubr.bf16.gmra.mrb[56].mxu0 %v5975_v13  ;;  %v6374_v13 = vld [vmem:[%s6760_s3] sm:$0x3f] }
 0x133   :  { %2715 = vmatprep.mubr.bf16.mxu0 %v5987_v58  ;;  %v2853_v58 = vsub.s32 1, %v6366_v38 }
 0x13a   :  { %2716 = vmatmul.mubr.bf16.gmra.mrb[60].mxu0 %v6018_v4  ;;  %v6381_v4 = vadd.s32 8, %v6366_v38 }
 0x13b   :  { %2758 = vmatprep.mubr.bf16.mxu0 %v5029_v1 }
 0x142   :  { %2759 = vmatmul.mubr.bf16.vlgmr.msra.gmra.mrb[32].mxu0 %v5187_v49  ;;  %v2850_v49 = vrot.slane %v6374_v13, %v2849_v22 }
 0x143   :  { %2768 = vmatprep.mubr.bf16.mxu0 %v5029_v1 }
 0x144   :  { %vm2871_vm4 = vcmp.le.s32.totalorder %v6366_v38, %v2850_v49  ;;  %vm2877_vm5 = vcmp.le.s32.totalorder %v6381_v4, %v2850_v49 }
 0x145   :  { %v6394_v17 = vsel %vm2871_vm4, 0.0, %v5030_v50  ;;  %v6398_v54 = vsel %vm2877_vm5, 0.0, %v5030_v50 }
 0x14a   :  { %2769 = vmatmul.mubr.bf16.gmra.mrb[36].mxu0 %v5235_v5  ;;  %v2854_v5 = vrot.slane %v6374_v13, %v2853_v58 }
 0x14b   :  { %2778 = vmatprep.mubr.bf16.mxu0 %v5029_v1 }
 0x14c   :  { %vm2872_vm6 = vcmp.le.s32.totalorder %v6366_v38, %v2854_v5  ;;  %vm2878_vm7 = vcmp.le.s32.totalorder %v6381_v4, %v2854_v5 }
 0x14d   :  { %v6401_v33 = vsel %vm2872_vm6, 0.0, %v5030_v50  ;;  %v6405_v59 = vsel %vm2878_vm7, 0.0, %v5030_v50 }
 0x152   :  { %2779 = vmatmul.mubr.bf16.gmra.mrb[40].mxu0 %v5281_v20 }
 0x153   :  { %2788 = vmatprep.mubr.bf16.mxu0 %v5029_v1 }
 0x155   :  { %v1969_v16 = vpop.f32.mrb[0].mxu0 }
 0x156   :  { %v4394_v39 = vadd.f32 %v6168_v35, %v1969_v16  ;;  %v1971_v57 = vpop.f32.mrb[1].mxu0 }
 0x157   :  { %v4395_v20 = vadd.f32 %v6170_v44, %v1971_v57  ;;  %v1973_v28 = vpop.f32.mrb[2].mxu0 }
 0x158   :  { %v4396_v43 = vadd.f32 %v6175_v53, %v1973_v28  ;;  %v1975_v24 = vpop.f32.mrb[3].mxu0  ;;  %v2895_v34 = vadd.f32 %v4394_v39, %v6394_v17 }
 0x159   :  { %v4397_v35 = vadd.f32 %v6180_v48, %v1975_v24  ;;  %v2896_v44 = vadd.f32 %v4395_v20, %v6401_v33 }
 0x15a   :  { %v2901_v9 = vadd.f32 %v4396_v43, %v6398_v54  ;;  %2789 = vmatmul.mubr.bf16.gmra.mrb[44].mxu0 %v5321_v37 }
 0x15b   :  { %v2902_v29 = vadd.f32 %v4397_v35, %v6405_v59  ;;  %2798 = vmatprep.mubr.bf16.mxu0 %v5029_v1 }
 0x15c   :  { %v2991_v18 = vmax.f32 %v2895_v34, %v2901_v9 }
 0x15d   :  { %v2998_v53 = vmax.f32 %v2896_v44, %v2902_v29  ;;  %v1979_v42 = vpop.f32.mrb[4].mxu0 }
 0x15e   :  { %v2992_v62 = vrot.slane %v2991_v18, 4  ;;  %v4398_v32 = vadd.f32 %v6192_v52, %v1979_v42  ;;  %v1981_v49 = vpop.f32.mrb[5].mxu0 }
 0x15f   :  { %v2999_v48 = vrot.slane %v2998_v53, 4  ;;  %v4399_v5 = vadd.f32 %v6194_v51, %v1981_v49  ;;  %v1983_v16 = vpop.f32.mrb[6].mxu0 }
 0x160   :  { %v2993_v39 = vmax.f32 %v2991_v18, %v2992_v62  ;;  %v4400_v37 = vadd.f32 %v6199_v61, %v1983_v16  ;;  %v1985_v57 = vpop.f32.mrb[7].mxu0  ;;  %v2907_v43 = vadd.f32 %v4398_v32, %v6394_v17 }
 0x161   :  { %v3000_v20 = vmax.f32 %v2998_v53, %v2999_v48  ;;  %v4401_v28 = vadd.f32 %v6204_v27, %v1985_v57  ;;  %v2908_v52 = vadd.f32 %v4399_v5, %v6401_v33  ;;  %v4980_v57 = vld [vmem:[%s6759_s4 + $0xc0] sm:$0xff]  }
 0x162   :  { %v2913_v24 = vadd.f32 %v4400_v37, %v6398_v54  ;;  %2799 = vmatmul.mubr.bf16.gmra.mrb[48].mxu0 %v5369_v2  ;;  %v2994_v51 = vrot.slane %v2993_v39, 2  ;;  %4350 = vmatprep.subr.bf16.mxu1 %v4980_v57 }
 0x163   :  { %v2914_v35 = vadd.f32 %v4401_v28, %v6405_v59  ;;  %2808 = vmatprep.mubr.bf16.mxu0 %v5029_v1  ;;  %v3001_v9 = vrot.slane %v3000_v20, 2 }
 0x164   :  { %v3033_v34 = vmax.f32 %v2907_v43, %v2913_v24  ;;  %v2995_v2 = vmax.f32 %v2993_v39, %v2994_v51 }
 0x165   :  { %v3040_v61 = vmax.f32 %v2908_v52, %v2914_v35  ;;  %v1989_v44 = vpop.f32.mrb[8].mxu0  ;;  %v3002_v5 = vmax.f32 %v3000_v20, %v3001_v9 }
 0x166   :  { %v3034_v29 = vrot.slane %v3033_v34, 4  ;;  %v4402_v27 = vadd.f32 %v6216_v14, %v1989_v44  ;;  %v1991_v18 = vpop.f32.mrb[9].mxu0 }
 0x167   :  { %v3041_v53 = vrot.slane %v3040_v61, 4  ;;  %v4403_v42 = vadd.f32 %v6218_v63, %v1991_v18  ;;  %v1993_v62 = vpop.f32.mrb[10].mxu0  ;;  %v3003_v52 = vrot.slane %v3002_v5, 1 }
 0x168   :  { %v3035_v32 = vmax.f32 %v3033_v34, %v3034_v29  ;;  %v4404_v49 = vadd.f32 %v6220_v45, %v1993_v62  ;;  %v1995_v48 = vpop.f32.mrb[11].mxu0  ;;  %v2919_v14 = vadd.f32 %v4402_v27, %v6394_v17 }
 0x169   :  { %v3042_v16 = vmax.f32 %v3040_v61, %v3041_v53  ;;  %v4405_v37 = vadd.f32 %v6225_v56, %v1995_v48  ;;  %v2920_v39 = vadd.f32 %v4403_v42, %v6401_v33  ;;  %v2996_v56 = vrot.slane %v2995_v2, 1 }
 0x16a   :  { %v3036_v28 = vrot.slane %v3035_v32, 2  ;;  %v2925_v43 = vadd.f32 %v4404_v49, %v6398_v54  ;;  %2809 = vmatmul.mubr.bf16.gmra.mrb[52].mxu0 %v5427_v31 }
 0x16b   :  { %v3043_v63 = vrot.slane %v3042_v16, 2  ;;  %v2926_v45 = vadd.f32 %v4405_v37, %v6405_v59  ;;  %2818 = vmatprep.mubr.bf16.mxu0 %v5029_v1  ;;  %v2997_v42 = vmax.f32 %v2995_v2, %v2996_v56 }
 0x16c   :  { %v3037_v20 = vmax.f32 %v3035_v32, %v3036_v28  ;;  %v3075_v24 = vmax.f32 %v2919_v14, %v2925_v43 }
 0x16d   :  { %v3044_v35 = vmax.f32 %v3042_v16, %v3043_v63  ;;  %v3082_v51 = vmax.f32 %v2920_v39, %v2926_v45  ;;  %v1999_v34 = vpop.f32.mrb[12].mxu0  ;;  %v3004_v16 = vmax.f32 %v3002_v5, %v3003_v52 }
 0x16e   :  { %v3038_v9 = vrot.slane %v3037_v20, 1  ;;  %v3076_v61 = vrot.slane %v3075_v24, 4  ;;  %v4406_v44 = vadd.f32 %v6246_v21, %v1999_v34  ;;  %v2001_v31 = vpop.f32.mrb[13].mxu0 }
 0x16f   :  { %v3045_v29 = vrot.slane %v3044_v35, 1  ;;  %v3083_v27 = vrot.slane %v3082_v51, 4  ;;  %v4407_v18 = vadd.f32 %v6251_v11, %v2001_v31  ;;  %v2003_v53 = vpop.f32.mrb[14].mxu0 }
 0x170   :  { %v3039_v62 = vmax.f32 %v3037_v20, %v3038_v9  ;;  %v3077_v49 = vmax.f32 %v3075_v24, %v3076_v61  ;;  %v4408_v32 = vadd.f32 %v6253_v26, %v2003_v53  ;;  %v2005_v48 = vpop.f32.mrb[15].mxu0  ;;  %v2931_v43 = vadd.f32 %v4406_v44, %v6394_v17 }
 0x171   :  { %v3046_v37 = vmax.f32 %v3044_v35, %v3045_v29  ;;  %v3084_v57 = vmax.f32 %v3082_v51, %v3083_v27  ;;  %v4409_v28 = vadd.f32 %v6261_v47, %v2005_v48  ;;  %v2932_v26 = vadd.f32 %v4407_v18, %v6401_v33 }
 0x172   :  { %v3382_v21 = vsel %vm3381_vm8, %v3039_v62, %v2997_v42  ;;  %v3078_v14 = vrot.slane %v3077_v49, 2  ;;  %v2937_v63 = vadd.f32 %v4408_v32, %v6398_v54  ;;  %2819 = vmatmul.mubr.bf16.gmra.mrb[56].mxu0 %v5481_v0 }
 0x173   :  { %v3395_v11 = vsel %vm3381_vm8, %v3046_v37, %v3004_v16  ;;  %v3085_v2 = vrot.slane %v3084_v57, 2  ;;  %v2938_v5 = vadd.f32 %v4409_v28, %v6405_v59  ;;  %2828 = vmatprep.mubr.bf16.mxu0 %v5029_v1 }
 0x174   :  { %v3079_v39 = vmax.f32 %v3077_v49, %v3078_v14  ;;  %v3117_v47 = vmax.f32 %v2931_v43, %v2937_v63 }
 0x175   :  { %v3086_v45 = vmax.f32 %v3084_v57, %v3085_v2  ;;  %v3124_v56 = vmax.f32 %v2932_v26, %v2938_v5  ;;  %v2009_v20 = vpop.f32.mrb[16].mxu0 }
 0x176   :  { %v3080_v24 = vrot.slane %v3079_v39, 1  ;;  %v3118_v52 = vrot.slane %v3117_v47, 4  ;;  %v4410_v35 = vadd.f32 %v6282_v55, %v2009_v20  ;;  %v2011_v51 = vpop.f32.mrb[17].mxu0 }
 0x177   :  { %v3087_v0 = vrot.slane %v3086_v45, 1  ;;  %v3125_v34 = vrot.slane %v3124_v56, 4  ;;  %v4411_v9 = vadd.f32 %v6287_v25, %v2011_v51  ;;  %v2013_v61 = vpop.f32.mrb[18].mxu0 }
 0x178   :  { %v3081_v44 = vmax.f32 %v3079_v39, %v3080_v24  ;;  %v3119_v31 = vmax.f32 %v3117_v47, %v3118_v52  ;;  %v4412_v1 = vadd.f32 %v6289_v3, %v2013_v61  ;;  %v2015_v29 = vpop.f32.mrb[19].mxu0  ;;  %v2943_v55 = vadd.f32 %v4410_v35, %v6394_v17 }
 0x179   :  { %v3088_v27 = vmax.f32 %v3086_v45, %v3087_v0  ;;  %v3126_v18 = vmax.f32 %v3124_v56, %v3125_v34  ;;  %v4413_v53 = vadd.f32 %v6297_v7, %v2015_v29  ;;  %v2944_v48 = vadd.f32 %v4411_v9, %v6401_v33 }
 0x17a   :  { %v3384_v42 = vsel %vm3383_vm9, %v3081_v44, %v3382_v21  ;;  %v3120_v62 = vrot.slane %v3119_v31, 2  ;;  %v2949_v49 = vadd.f32 %v4412_v1, %v6398_v54  ;;  %2829 = vmatmul.mubr.bf16.gmra.mrb[60].mxu0 %v5531_v60 }
 0x17b   :  { %v3396_v25 = vsel %vm3383_vm9, %v3088_v27, %v3395_v11  ;;  %v3127_v32 = vrot.slane %v3126_v18, 2  ;;  %v2950_v3 = vadd.f32 %v4413_v53, %v6405_v59 }
 0x17c   :  { %v3121_v16 = vmax.f32 %v3119_v31, %v3120_v62  ;;  %v3159_v37 = vmax.f32 %v2943_v55, %v2949_v49 }
 0x17d   :  { %v3128_v57 = vmax.f32 %v3126_v18, %v3127_v32  ;;  %v3166_v7 = vmax.f32 %v2944_v48, %v2950_v3  ;;  %v2019_v28 = vpop.f32.mrb[20].mxu0 }
 0x17e   :  { %v3122_v21 = vrot.slane %v3121_v16, 1  ;;  %v3160_v14 = vrot.slane %v3159_v37, 4  ;;  %v4414_v43 = vadd.f32 %v6314_v40, %v2019_v28  ;;  %v2021_v63 = vpop.f32.mrb[21].mxu0 }
 0x17f   :  { %v3129_v2 = vrot.slane %v3128_v57, 1  ;;  %v3167_v60 = vrot.slane %v3166_v7, 4  ;;  %v4415_v11 = vadd.f32 %v6316_v19, %v2021_v63  ;;  %v2023_v26 = vpop.f32.mrb[22].mxu0 }
 0x180   :  { %v3123_v5 = vmax.f32 %v3121_v16, %v3122_v21  ;;  %v3161_v39 = vmax.f32 %v3159_v37, %v3160_v14  ;;  %v4416_v47 = vadd.f32 %v6318_v23, %v2023_v26  ;;  %v2025_v45 = vpop.f32.mrb[23].mxu0  ;;  %v2955_v40 = vadd.f32 %v4414_v43, %v6394_v17 }
 0x181   :  { %v3130_v56 = vmax.f32 %v3128_v57, %v3129_v2  ;;  %v3168_v20 = vmax.f32 %v3166_v7, %v3167_v60  ;;  %v4417_v24 = vadd.f32 %v6323_v12, %v2025_v45  ;;  %v2956_v34 = vadd.f32 %v4415_v11, %v6401_v33 }
 0x182   :  { %v3386_v52 = vsel %vm3385_vm10, %v3123_v5, %v3384_v42  ;;  %v3162_v35 = vrot.slane %v3161_v39, 2  ;;  %v2961_v51 = vadd.f32 %v4416_v47, %v6398_v54 }
 0x183   :  { %v3397_v0 = vsel %vm3385_vm10, %v3130_v56, %v3396_v25  ;;  %v3169_v19 = vrot.slane %v3168_v20, 2  ;;  %v2962_v9 = vadd.f32 %v4417_v24, %v6405_v59 }
 0x184   :  { %v3163_v23 = vmax.f32 %v3161_v39, %v3162_v35  ;;  %v3201_v61 = vmax.f32 %v2955_v40, %v2961_v51 }
 0x185   :  { %v3170_v44 = vmax.f32 %v3168_v20, %v3169_v19  ;;  %v3208_v31 = vmax.f32 %v2956_v34, %v2962_v9  ;;  %v2029_v1 = vpop.f32.mrb[24].mxu0 }
 0x186   :  { %v3164_v12 = vrot.slane %v3163_v23, 1  ;;  %v3202_v29 = vrot.slane %v3201_v61, 4  ;;  %v4418_v27 = vadd.f32 %v6336_v8, %v2029_v1  ;;  %v2031_v18 = vpop.f32.mrb[25].mxu0 }
 0x187   :  { %v3171_v53 = vrot.slane %v3170_v44, 1  ;;  %v3209_v42 = vrot.slane %v3208_v31, 4  ;;  %v4419_v62 = vadd.f32 %v6341_v41, %v2031_v18  ;;  %v2033_v55 = vpop.f32.mrb[26].mxu0 }
 0x188   :  { %v3165_v49 = vmax.f32 %v3163_v23, %v3164_v12  ;;  %v3203_v25 = vmax.f32 %v3201_v61, %v3202_v29  ;;  %v4420_v32 = vadd.f32 %v6343_v6, %v2033_v55  ;;  %v2035_v48 = vpop.f32.mrb[27].mxu0  ;;  %v2967_v8 = vadd.f32 %v4418_v27, %v6394_v17 }
 0x189   :  { %v3172_v3 = vmax.f32 %v3170_v44, %v3171_v53  ;;  %v3210_v16 = vmax.f32 %v3208_v31, %v3209_v42  ;;  %v4421_v37 = vadd.f32 %v6345_v46, %v2035_v48  ;;  %v2968_v41 = vadd.f32 %v4419_v62, %v6401_v33 }
 0x18a   :  { %v3388_v57 = vsel %vm3387_vm11, %v3165_v49, %v3386_v52  ;;  %v3204_v7 = vrot.slane %v3203_v25, 2  ;;  %v2973_v28 = vadd.f32 %v4420_v32, %v6398_v54 }
 0x18b   :  { %v3211_v21 = vrot.slane %v3210_v16, 2  ;;  %v2974_v14 = vadd.f32 %v4421_v37, %v6405_v59  ;;  %v3398_v43 = vsel %vm3387_vm11, %v3172_v3, %v3397_v0  ;;  %v6495_v3 = vld [vmem:[%s6761_s2] sm:$0x3f] }
 0x18c   :  { %v3205_v6 = vmax.f32 %v3203_v25, %v3204_v7  ;;  %v3243_v63 = vmax.f32 %v2967_v8, %v2973_v28  ;;  %v3462_v7 = vrot.slane %v6495_v3, %v2849_v22  ;;  %v3466_v28 = vrot.slane %v6495_v3, %v2853_v58  ;;  %v4981_v22 = vld [vmem:[%s6759_s4 + $0x80] sm:$0xff]   ;;  %v4982_v58 = vld [vmem:[%s6759_s4 + $0xc8] sm:$0xff]  }
 0x18d   :  { %v3212_v2 = vmax.f32 %v3210_v16, %v3211_v21  ;;  %v3250_v60 = vmax.f32 %v2968_v41, %v2974_v14  ;;  %v2039_v11 = vpop.f32.mrb[28].mxu0 }
 0x18e   :  { %v3206_v46 = vrot.slane %v3205_v6, 1  ;;  %v3244_v26 = vrot.slane %v3243_v63, 4  ;;  %v4422_v5 = vadd.f32 %v6352_v36, %v2039_v11  ;;  %v2041_v39 = vpop.f32.mrb[29].mxu0  ;;  %v2857_v11 = vsub.s32 2, %v6366_v38 }
 0x18f   :  { %v3213_v47 = vrot.slane %v3212_v2, 1  ;;  %v3251_v45 = vrot.slane %v3250_v60, 4  ;;  %v4423_v56 = vadd.f32 %v6354_v30, %v2041_v39  ;;  %v2043_v20 = vpop.f32.mrb[30].mxu0  ;;  %v4983_v39 = vld [vmem:[%s6759_s4 + $0x88] sm:$0xff]  }
 0x190   :  { %v3207_v24 = vmax.f32 %v3205_v6, %v3206_v46  ;;  %v3245_v52 = vmax.f32 %v3243_v63, %v3244_v26  ;;  %v4424_v35 = vadd.f32 %v6356_v15, %v2043_v20  ;;  %v2045_v40 = vpop.f32.mrb[31].mxu0  ;;  %v2979_v36 = vadd.f32 %v4422_v5, %v6394_v17 }
 0x191   :  { %v3214_v51 = vmax.f32 %v3212_v2, %v3213_v47  ;;  %v3252_v0 = vmax.f32 %v3250_v60, %v3251_v45  ;;  %v4425_v19 = vadd.f32 %v6358_v10, %v2045_v40  ;;  %v2980_v30 = vadd.f32 %v4423_v56, %v6401_v33  ;;  %v4984_v45 = vld [vmem:[%s6759_s4 + $0xd0] sm:$0xff]  }
 0x192   :  { %v3390_v34 = vsel %vm3389_vm12, %v3207_v24, %v3388_v57  ;;  %v3246_v9 = vrot.slane %v3245_v52, 2  ;;  %v2985_v23 = vadd.f32 %v4424_v35, %v6398_v54  ;;  %v2861_v26 = vsub.s32 3, %v6366_v38  ;;  %v4985_v56 = vld [vmem:[%s6759_s4 + $0x90] sm:$0xff]  }
 0x193   :  { %v3253_v61 = vrot.slane %v3252_v0, 2  ;;  %v2986_v44 = vadd.f32 %v4425_v19, %v6405_v59  ;;  %v3399_v31 = vsel %vm3389_vm12, %v3214_v51, %v3398_v43  ;;  %v2858_v5 = vrot.slane %v6374_v13, %v2857_v11 }
 0x194   :  { %v3247_v15 = vmax.f32 %v3245_v52, %v3246_v9  ;;  %v3285_v1 = vmax.f32 %v2979_v36, %v2985_v23  ;;  %v2862_v47 = vrot.slane %v6374_v13, %v2861_v26  ;;  %v4986_v13 = vld [vmem:[%s6759_s4 + $0xd8] sm:$0xff]  }
 0x195   :  { %v3254_v12 = vmax.f32 %v3252_v0, %v3253_v61  ;;  %v3292_v29 = vmax.f32 %v2980_v30, %v2986_v44  ;;  %vm2873_vm15 = vcmp.le.s32.totalorder %v6366_v38, %v2858_v5  ;;  %vm2879_vm0 = vcmp.le.s32.totalorder %v6381_v4, %v2858_v5  ;;  %v4987_v0 = vld [vmem:[%s6759_s4 + $0x98] sm:$0xff]  }
 0x196   :  { %v3248_v27 = vrot.slane %v3247_v15, 1  ;;  %v3286_v10 = vrot.slane %v3285_v1, 4  ;;  %vm2874_vm1 = vcmp.le.s32.totalorder %v6366_v38, %v2862_v47  ;;  %vm2880_vm2 = vcmp.le.s32.totalorder %v6381_v4, %v2862_v47 }
 0x197   :  { %v3255_v18 = vrot.slane %v3254_v12, 1  ;;  %v3293_v53 = vrot.slane %v3292_v29, 4  ;;  %v6536_v24 = vsel %vm2873_vm15, 0.0, %v5030_v50  ;;  %v6539_v52 = vsel %vm2879_vm0, 0.0, %v5030_v50 }
 0x198   :  { %v3249_v42 = vmax.f32 %v3247_v15, %v3248_v27  ;;  %v3287_v17 = vmax.f32 %v3285_v1, %v3286_v10  ;;  %v6542_v40 = vsel %vm2874_vm1, 0.0, %v5030_v50  ;;  %v6545_v51 = vsel %vm2880_vm2, 0.0, %v5030_v50  ;;  %v4990_v1 = vld [vmem:[%s6759_s4 + $0xe8] sm:$0xff]  }
 0x199   :  { %v3256_v62 = vmax.f32 %v3254_v12, %v3255_v18  ;;  %v3294_v54 = vmax.f32 %v3292_v29, %v3293_v53  ;;  %v4991_v53 = vld [vmem:[%s6759_s4 + $0xa8] sm:$0xff]  }
 0x19a   :  { %v3392_v55 = vsel %vm3391_vm13, %v3249_v42, %v3390_v34  ;;  %v3288_v33 = vrot.slane %v3287_v17, 2  ;;  %v4988_v34 = vld [vmem:[%s6759_s4 + $0xe0] sm:$0xff]  }
 0x19b   :  { %v3295_v49 = vrot.slane %v3294_v54, 2  ;;  %v3400_v59 = vsel %vm3391_vm13, %v3256_v62, %v3399_v31  ;;  %v4989_v31 = vld [vmem:[%s6759_s4 + $0xa0] sm:$0xff]   ;;  %v4992_v62 = vld [vmem:[%s6759_s4 + $0xf0] sm:$0xff]  }
 0x19c   :  { %v3289_v25 = vmax.f32 %v3287_v17, %v3288_v33 }
 0x19d   :  { %v3296_v32 = vmax.f32 %v3294_v54, %v3295_v49 }
 0x19e   :  { %v3290_v48 = vrot.slane %v3289_v25, 1 }
 0x19f   :  { %v3297_v16 = vrot.slane %v3296_v32, 1 }
 0x1a0   :  { %v3291_v37 = vmax.f32 %v3289_v25, %v3290_v48  ;;  %v4993_v48 = vld [vmem:[%s6759_s4 + $0xb0] sm:$0xff]  }
 0x1a1   :  { %v3298_v57 = vmax.f32 %v3296_v32, %v3297_v16 }
 0x1a2   :  { %v3394_v8 = vsel %vm3393_vm14, %v3291_v37, %v3392_v55 }
 0x1a3   :  { %v3401_v21 = vsel %vm3393_vm14, %v3298_v57, %v3400_v59  ;;  %v3436_v41 = vmax.f32 %v3394_v8, -1e+30  ;;  %v4994_v57 = vld [vmem:[%s6759_s4 + $0xf8] sm:$0xff]  }
 0x1a4   :  { %v3437_v14 = vmax.f32 %v3401_v21, -1e+30 }
 0x1a5   :  { %v3489_v43 = vadd.f32 %v3462_v7, %v3436_v41 }
 0x1a6   :  { %v3490_v6 = vadd.f32 %v3466_v28, %v3437_v14 }
 0x1a7   :  { %v3495_v63 = vmax.f32 %v3489_v43, 0.0  ;;  %v4995_v43 = vld [vmem:[%s6759_s4 + $0xb8] sm:$0xff]  }
 0x1a8   :  { %v3496_v2 = vmax.f32 %v3490_v6, 0.0 }
 0x1a9   :  { %v3501_v46 = vpack.c.bf16 %v3495_v63, %v3495_v63 }
 0x1aa   :  { %v3502_v60 = vpack.c.bf16 %v3496_v2, %v3496_v2 }
 0x1ac   :  { %3930 = vmatprep.mubr.bf16.mxu1 %v3502_v60 }
 0x1ad   :  { %3931 = vmatmul.mubr.bf16.vlgmr.msra.gmra.mrb[64].mxu1 %v3501_v46 }
 0x1ae   :  { %4351 = vmatpush3.bf16.msra.mxu1 %v4981_v22 }
 0x1af   :  { %4352 = vmatprep.subr.bf16.mxu1 %v4982_v58 }
 0x1b2   :  { %4353 = vmatpush3.bf16.msra.mxu1 %v4983_v39 }
 0x1b3   :  { %4354 = vmatprep.subr.bf16.mxu1 %v4984_v45  ;;  %v4996_v45 = vld [vmem:[%s6759_s4 + $0x140] sm:$0xff]  }
 0x1b6   :  { %v2421_v20 = vpop.f32.mrb[32].mxu1  ;;  %4355 = vmatpush3.bf16.msra.mxu1 %v4985_v56 }
 0x1b7   :  { %v2423_v35 = vpop.f32.mrb[33].mxu1  ;;  %4356 = vmatprep.subr.bf16.mxu1 %v4986_v13  ;;  %v2897_v9 = vadd.f32 %v6536_v24, %v2421_v20 }
 0x1b8   :  { %v2425_v19 = vpop.f32.mrb[34].mxu1  ;;  %v2898_v61 = vadd.f32 %v6542_v40, %v2423_v35 }
 0x1b9   :  { %v2903_v36 = vadd.f32 %v6539_v52, %v2425_v19  ;;  %v2427_v23 = vpop.f32.mrb[35].mxu1 }
 0x1ba   :  { %v2904_v30 = vadd.f32 %v6545_v51, %v2427_v23  ;;  %4357 = vmatpush3.bf16.msra.mxu1 %v4987_v0 }
 0x1bb   :  { %v3005_v44 = vmax.f32 %v2897_v9, %v2903_v36  ;;  %4358 = vmatprep.subr.bf16.mxu1 %v4988_v34 }
 0x1bc   :  { %v3012_v15 = vmax.f32 %v2898_v61, %v2904_v30 }
 0x1bd   :  { %v3006_v12 = vrot.slane %v3005_v44, 4 }
 0x1be   :  { %v3013_v29 = vrot.slane %v3012_v15, 4  ;;  %v2431_v27 = vpop.f32.mrb[36].mxu1  ;;  %4359 = vmatpush3.bf16.msra.mxu1 %v4989_v31 }
 0x1bf   :  { %v3007_v10 = vmax.f32 %v3005_v44, %v3006_v12  ;;  %v2433_v18 = vpop.f32.mrb[37].mxu1  ;;  %4360 = vmatprep.subr.bf16.mxu1 %v4990_v1  ;;  %v2909_v54 = vadd.f32 %v6536_v24, %v2431_v27 }
 0x1c0   :  { %v3014_v42 = vmax.f32 %v3012_v15, %v3013_v29  ;;  %v2435_v17 = vpop.f32.mrb[38].mxu1  ;;  %v2910_v49 = vadd.f32 %v6542_v40, %v2433_v18 }
 0x1c1   :  { %v2915_v55 = vadd.f32 %v6539_v52, %v2435_v17  ;;  %v2437_v33 = vpop.f32.mrb[39].mxu1  ;;  %v3008_v25 = vrot.slane %v3007_v10, 2 }
 0x1c2   :  { %v2916_v59 = vadd.f32 %v6545_v51, %v2437_v33  ;;  %4361 = vmatpush3.bf16.msra.mxu1 %v4991_v53  ;;  %v3015_v16 = vrot.slane %v3014_v42, 2 }
 0x1c3   :  { %v3047_v32 = vmax.f32 %v2909_v54, %v2915_v55  ;;  %4362 = vmatprep.subr.bf16.mxu1 %v4992_v62  ;;  %v3009_v21 = vmax.f32 %v3007_v10, %v3008_v25 }
 0x1c4   :  { %v3054_v37 = vmax.f32 %v2910_v49, %v2916_v59  ;;  %v3016_v6 = vmax.f32 %v3014_v42, %v3015_v16 }
 0x1c5   :  { %v3048_v7 = vrot.slane %v3047_v32, 4  ;;  %v3010_v56 = vrot.slane %v3009_v21, 1 }
 0x1c6   :  { %v3055_v8 = vrot.slane %v3054_v37, 4  ;;  %v2441_v28 = vpop.f32.mrb[40].mxu1  ;;  %4363 = vmatpush3.bf16.msra.mxu1 %v4993_v48  ;;  %v3017_v35 = vrot.slane %v3016_v6, 1 }
 0x1c7   :  { %v3049_v41 = vmax.f32 %v3047_v32, %v3048_v7  ;;  %v2443_v14 = vpop.f32.mrb[41].mxu1  ;;  %4364 = vmatprep.subr.bf16.mxu1 %v4994_v57  ;;  %v2921_v22 = vadd.f32 %v6536_v24, %v2441_v28  ;;  %v3011_v30 = vmax.f32 %v3009_v21, %v3010_v56 }
 0x1c8   :  { %v3056_v63 = vmax.f32 %v3054_v37, %v3055_v8  ;;  %v2445_v2 = vpop.f32.mrb[42].mxu1  ;;  %v2922_v39 = vadd.f32 %v6542_v40, %v2443_v14  ;;  %v3018_v1 = vmax.f32 %v3016_v6, %v3017_v35 }
 0x1c9   :  { %v3050_v60 = vrot.slane %v3049_v41, 2  ;;  %v2927_v46 = vadd.f32 %v6539_v52, %v2445_v2  ;;  %v2447_v58 = vpop.f32.mrb[43].mxu1 }
 0x1ca   :  { %v3057_v5 = vrot.slane %v3056_v63, 2  ;;  %v2928_v47 = vadd.f32 %v6545_v51, %v2447_v58  ;;  %4365 = vmatpush3.bf16.msra.mxu1 %v4995_v43 }
 0x1cb   :  { %v3051_v13 = vmax.f32 %v3049_v41, %v3050_v60  ;;  %v3089_v20 = vmax.f32 %v2921_v22, %v2927_v46  ;;  %4372 = vmatprep.subr.bf16.mxu1 %v4996_v45 }
 0x1cc   :  { %v3058_v0 = vmax.f32 %v3056_v63, %v3057_v5  ;;  %v3096_v19 = vmax.f32 %v2922_v39, %v2928_v47 }
 0x1cd   :  { %v3052_v34 = vrot.slane %v3051_v13, 1  ;;  %v3090_v9 = vrot.slane %v3089_v20, 4 }
 0x1ce   :  { %v3059_v36 = vrot.slane %v3058_v0, 1  ;;  %v3097_v23 = vrot.slane %v3096_v19, 4  ;;  %v2451_v61 = vpop.f32.mrb[44].mxu1 }
 0x1cf   :  { %v3053_v44 = vmax.f32 %v3051_v13, %v3052_v34  ;;  %v3091_v31 = vmax.f32 %v3089_v20, %v3090_v9  ;;  %v2453_v15 = vpop.f32.mrb[45].mxu1  ;;  %v2933_v53 = vadd.f32 %v6536_v24, %v2451_v61 }
 0x1d0   :  { %v3060_v12 = vmax.f32 %v3058_v0, %v3059_v36  ;;  %v3098_v29 = vmax.f32 %v3096_v19, %v3097_v23  ;;  %v2455_v27 = vpop.f32.mrb[46].mxu1  ;;  %v2934_v55 = vadd.f32 %v6542_v40, %v2453_v15 }
 0x1d1   :  { %v3402_v10 = vsel %vm3381_vm8, %v3053_v44, %v3011_v30  ;;  %v3092_v18 = vrot.slane %v3091_v31, 2  ;;  %v2939_v42 = vadd.f32 %v6539_v52, %v2455_v27  ;;  %v2457_v17 = vpop.f32.mrb[47].mxu1 }
 0x1d2   :  { %v3409_v62 = vsel %vm3381_vm8, %v3060_v12, %v3018_v1  ;;  %v3099_v54 = vrot.slane %v3098_v29, 2  ;;  %v2940_v33 = vadd.f32 %v6545_v51, %v2457_v17 }
 0x1d3   :  { %v3093_v49 = vmax.f32 %v3091_v31, %v3092_v18  ;;  %v3131_v59 = vmax.f32 %v2933_v53, %v2939_v42 }
 0x1d4   :  { %v3100_v25 = vmax.f32 %v3098_v29, %v3099_v54  ;;  %v3138_v32 = vmax.f32 %v2934_v55, %v2940_v33 }
 0x1d5   :  { %v3094_v48 = vrot.slane %v3093_v49, 1  ;;  %v3132_v16 = vrot.slane %v3131_v59, 4 }
 0x1d6   :  { %v3101_v37 = vrot.slane %v3100_v25, 1  ;;  %v3139_v57 = vrot.slane %v3138_v32, 4  ;;  %v2461_v7 = vpop.f32.mrb[48].mxu1 }
 0x1d7   :  { %v3095_v8 = vmax.f32 %v3093_v49, %v3094_v48  ;;  %v3133_v28 = vmax.f32 %v3131_v59, %v3132_v16  ;;  %v2463_v21 = vpop.f32.mrb[49].mxu1  ;;  %v2945_v2 = vadd.f32 %v6536_v24, %v2461_v7 }
 0x1d8   :  { %v3102_v41 = vmax.f32 %v3100_v25, %v3101_v37  ;;  %v3140_v14 = vmax.f32 %v3138_v32, %v3139_v57  ;;  %v2465_v43 = vpop.f32.mrb[50].mxu1  ;;  %v2946_v5 = vadd.f32 %v6542_v40, %v2463_v21 }
 0x1d9   :  { %v3403_v6 = vsel %vm3383_vm9, %v3095_v8, %v3402_v10  ;;  %v3134_v63 = vrot.slane %v3133_v28, 2  ;;  %v2951_v60 = vadd.f32 %v6539_v52, %v2465_v43  ;;  %v2467_v22 = vpop.f32.mrb[51].mxu1 }
 0x1da   :  { %v3410_v46 = vsel %vm3383_vm9, %v3102_v41, %v3409_v62  ;;  %v3141_v58 = vrot.slane %v3140_v14, 2  ;;  %v2952_v39 = vadd.f32 %v6545_v51, %v2467_v22 }
 0x1db   :  { %v3135_v47 = vmax.f32 %v3133_v28, %v3134_v63  ;;  %v3173_v45 = vmax.f32 %v2945_v2, %v2951_v60 }
 0x1dc   :  { %v3142_v56 = vmax.f32 %v3140_v14, %v3141_v58  ;;  %v3180_v13 = vmax.f32 %v2946_v5, %v2952_v39 }
 0x1dd   :  { %v3136_v20 = vrot.slane %v3135_v47, 1  ;;  %v3174_v35 = vrot.slane %v3173_v45, 4 }
 0x1de   :  { %v3143_v0 = vrot.slane %v3142_v56, 1  ;;  %v3181_v19 = vrot.slane %v3180_v13, 4  ;;  %v2471_v34 = vpop.f32.mrb[52].mxu1 }
 0x1df   :  { %v3137_v9 = vmax.f32 %v3135_v47, %v3136_v20  ;;  %v3175_v36 = vmax.f32 %v3173_v45, %v3174_v35  ;;  %v2473_v23 = vpop.f32.mrb[53].mxu1  ;;  %v2957_v1 = vadd.f32 %v6536_v24, %v2471_v34 }
 0x1e0   :  { %v3144_v61 = vmax.f32 %v3142_v56, %v3143_v0  ;;  %v3182_v30 = vmax.f32 %v3180_v13, %v3181_v19  ;;  %v2475_v44 = vpop.f32.mrb[54].mxu1  ;;  %v2958_v18 = vadd.f32 %v6542_v40, %v2473_v23 }
 0x1e1   :  { %v3404_v31 = vsel %vm3385_vm10, %v3137_v9, %v3403_v6  ;;  %v3176_v15 = vrot.slane %v3175_v36, 2  ;;  %v2963_v12 = vadd.f32 %v6539_v52, %v2475_v44  ;;  %v2477_v29 = vpop.f32.mrb[55].mxu1 }
 0x1e2   :  { %v3411_v27 = vsel %vm3385_vm10, %v3144_v61, %v3410_v46  ;;  %v3183_v10 = vrot.slane %v3182_v30, 2  ;;  %v2964_v53 = vadd.f32 %v6545_v51, %v2477_v29 }
 0x1e3   :  { %v3177_v42 = vmax.f32 %v3175_v36, %v3176_v15  ;;  %v3215_v17 = vmax.f32 %v2957_v1, %v2963_v12 }
 0x1e4   :  { %v3184_v62 = vmax.f32 %v3182_v30, %v3183_v10  ;;  %v3222_v54 = vmax.f32 %v2958_v18, %v2964_v53 }
 0x1e5   :  { %v3178_v55 = vrot.slane %v3177_v42, 1  ;;  %v3216_v33 = vrot.slane %v3215_v17, 4 }
 0x1e6   :  { %v3185_v49 = vrot.slane %v3184_v62, 1  ;;  %v3223_v59 = vrot.slane %v3222_v54, 4  ;;  %v2481_v25 = vpop.f32.mrb[56].mxu1 }
 0x1e7   :  { %v3179_v32 = vmax.f32 %v3177_v42, %v3178_v55  ;;  %v3217_v48 = vmax.f32 %v3215_v17, %v3216_v33  ;;  %v2483_v16 = vpop.f32.mrb[57].mxu1  ;;  %v2969_v21 = vadd.f32 %v6536_v24, %v2481_v25 }
 0x1e8   :  { %v3186_v37 = vmax.f32 %v3184_v62, %v3185_v49  ;;  %v3224_v57 = vmax.f32 %v3222_v54, %v3223_v59  ;;  %v2485_v7 = vpop.f32.mrb[58].mxu1  ;;  %v2970_v63 = vadd.f32 %v6542_v40, %v2483_v16 }
 0x1e9   :  { %v3405_v8 = vsel %vm3387_vm11, %v3179_v32, %v3404_v31  ;;  %v3218_v28 = vrot.slane %v3217_v48, 2  ;;  %v2975_v41 = vadd.f32 %v6539_v52, %v2485_v7  ;;  %v2487_v14 = vpop.f32.mrb[59].mxu1 }
 0x1ea   :  { %v3412_v43 = vsel %vm3387_vm11, %v3186_v37, %v3411_v27  ;;  %v3225_v6 = vrot.slane %v3224_v57, 2  ;;  %v2976_v2 = vadd.f32 %v6545_v51, %v2487_v14  ;;  %v3470_v37 = vrot.slane %v6495_v3, %v2857_v11 }
 0x1eb   :  { %v3219_v60 = vmax.f32 %v3217_v48, %v3218_v28  ;;  %v3257_v22 = vmax.f32 %v2969_v21, %v2975_v41 }
 0x1ec   :  { %v3226_v46 = vmax.f32 %v3224_v57, %v3225_v6  ;;  %v3264_v58 = vmax.f32 %v2970_v63, %v2976_v2  ;;  %v3474_v57 = vrot.slane %v6495_v3, %v2861_v26  ;;  %v4997_v2 = vld [vmem:[%s6759_s4 + $0x100] sm:$0xff]   ;;  %v4998_v26 = vld [vmem:[%s6759_s4 + $0x148] sm:$0xff]  }
 0x1ed   :  { %v3220_v5 = vrot.slane %v3219_v60, 1  ;;  %v3258_v39 = vrot.slane %v3257_v22, 4 }
 0x1ee   :  { %v3227_v47 = vrot.slane %v3226_v46, 1  ;;  %v3265_v45 = vrot.slane %v3264_v58, 4  ;;  %v2491_v56 = vpop.f32.mrb[60].mxu1 }
 0x1ef   :  { %v3221_v13 = vmax.f32 %v3219_v60, %v3220_v5  ;;  %v3259_v20 = vmax.f32 %v3257_v22, %v3258_v39  ;;  %v2493_v35 = vpop.f32.mrb[61].mxu1  ;;  %v2981_v23 = vadd.f32 %v6536_v24, %v2491_v56  ;;  %v2865_v60 = vsub.s32 4, %v6366_v38  ;;  %v5028_v5 = vld [vmem:[%s6760_s3] sm:$0x3f]  ;;  %v5002_v56 = vld [vmem:[%s6759_s4 + $0x158] sm:$0xff]  }
 0x1f0   :  { %v3228_v0 = vmax.f32 %v3226_v46, %v3227_v47  ;;  %v3266_v19 = vmax.f32 %v3264_v58, %v3265_v45  ;;  %v2495_v34 = vpop.f32.mrb[62].mxu1  ;;  %v2982_v31 = vadd.f32 %v6542_v40, %v2493_v35  ;;  %v2869_v22 = vsub.s32 5, %v6366_v38  ;;  %v4999_v46 = vld [vmem:[%s6759_s4 + $0x108] sm:$0xff]   ;;  %v5000_v58 = vld [vmem:[%s6759_s4 + $0x150] sm:$0xff]  }
 0x1f1   :  { %v3406_v9 = vsel %vm3389_vm12, %v3221_v13, %v3405_v8  ;;  %v3260_v36 = vrot.slane %v3259_v20, 2  ;;  %v2987_v61 = vadd.f32 %v6539_v52, %v2495_v34  ;;  %v2497_v30 = vpop.f32.mrb[63].mxu1  ;;  %v2866_v39 = vrot.slane %v5028_v5, %v2865_v60  ;;  %v5001_v45 = vld [vmem:[%s6759_s4 + $0x110] sm:$0xff]   ;;  %v5003_v13 = vld [vmem:[%s6759_s4 + $0x118] sm:$0xff]  }
 0x1f2   :  { %v3267_v44 = vrot.slane %v3266_v19, 2  ;;  %v2988_v15 = vadd.f32 %v6545_v51, %v2497_v30  ;;  %v3413_v1 = vsel %vm3389_vm12, %v3228_v0, %v3412_v43  ;;  %v2870_v47 = vrot.slane %v5028_v5, %v2869_v22 }
 0x1f3   :  { %v3261_v12 = vmax.f32 %v3259_v20, %v3260_v36  ;;  %v3299_v29 = vmax.f32 %v2981_v23, %v2987_v61  ;;  %vm2875_vm3 = vcmp.le.s32.totalorder %v6366_v38, %v2866_v39  ;;  %vm2881_vm4 = vcmp.le.s32.totalorder %v6381_v4, %v2866_v39 }
 0x1f4   :  { %v3268_v27 = vmax.f32 %v3266_v19, %v3267_v44  ;;  %v3306_v10 = vmax.f32 %v2982_v31, %v2988_v15  ;;  %vm2876_vm5 = vcmp.le.s32.totalorder %v6366_v38, %v2870_v47  ;;  %vm2882_vm6 = vcmp.le.s32.totalorder %v6381_v4, %v2870_v47  ;;  %v5004_v19 = vld [vmem:[%s6759_s4 + $0x160] sm:$0xff]  }
 0x1f5   :  { %v3262_v18 = vrot.slane %v3261_v12, 1  ;;  %v3300_v53 = vrot.slane %v3299_v29, 4  ;;  %v6664_v35 = vsel %vm2875_vm3, 0.0, %v5030_v50  ;;  %v6667_v0 = vsel %vm2881_vm4, 0.0, %v5030_v50  ;;  %v5005_v44 = vld [vmem:[%s6759_s4 + $0x120] sm:$0xff]  }
 0x1f6   :  { %v3269_v42 = vrot.slane %v3268_v27, 1  ;;  %v3307_v17 = vrot.slane %v3306_v10, 4  ;;  %v6673_v4 = vsel %vm2876_vm5, 0.0, %v5030_v50 }
 0x1f7   :  { %v3263_v62 = vmax.f32 %v3261_v12, %v3262_v18  ;;  %v3301_v24 = vmax.f32 %v3299_v29, %v3300_v53  ;;  %v5008_v53 = vld [vmem:[%s6759_s4 + $0x170] sm:$0xff]  }
 0x1f8   :  { %v3270_v54 = vmax.f32 %v3268_v27, %v3269_v42  ;;  %v3308_v52 = vmax.f32 %v3306_v10, %v3307_v17  ;;  %v5007_v27 = vld [vmem:[%s6759_s4 + $0x128] sm:$0xff]  }
 0x1f9   :  { %v3302_v55 = vrot.slane %v3301_v24, 2  ;;  %v3407_v33 = vsel %vm3391_vm13, %v3263_v62, %v3406_v9  ;;  %v6676_v9 = vsel %vm2882_vm6, 0.0, %v5030_v50  ;;  %v5006_v50 = vld [vmem:[%s6759_s4 + $0x168] sm:$0xff]  }
 0x1fa   :  { %v3309_v40 = vrot.slane %v3308_v52, 2  ;;  %v3414_v51 = vsel %vm3391_vm13, %v3270_v54, %v3413_v1 }
 0x1fb   :  { %v3303_v49 = vmax.f32 %v3301_v24, %v3302_v55 }
 0x1fc   :  { %v3310_v59 = vmax.f32 %v3308_v52, %v3309_v40 }
 0x1fd   :  { %v3304_v25 = vrot.slane %v3303_v49, 1 }
 0x1fe   :  { %v3311_v32 = vrot.slane %v3310_v59, 1 }
 0x1ff   :  { %v3305_v48 = vmax.f32 %v3303_v49, %v3304_v25  ;;  %v5010_v49 = vld [vmem:[%s6759_s4 + $0x178] sm:$0xff]  }
 0x200   :  { %v3312_v16 = vmax.f32 %v3310_v59, %v3311_v32 }
 0x201   :  { %v3408_v7 = vsel %vm3393_vm14, %v3305_v48, %v3407_v33  ;;  %v5009_v33 = vld [vmem:[%s6759_s4 + $0x130] sm:$0xff]  }
 0x202   :  { %v3415_v8 = vsel %vm3393_vm14, %v3312_v16, %v3414_v51  ;;  %v3438_v28 = vmax.f32 %v3408_v7, -1e+30 }
 0x203   :  { %v3439_v21 = vmax.f32 %v3415_v8, -1e+30 }
 0x204   :  { %v3491_v41 = vadd.f32 %v3470_v37, %v3438_v28  ;;  %v5011_v37 = vld [vmem:[%s6759_s4 + $0x138] sm:$0xff]  }
 0x205   :  { %v3492_v14 = vadd.f32 %v3474_v57, %v3439_v21 }
 0x206   :  { %v3497_v43 = vmax.f32 %v3491_v41, 0.0 }
 0x207   :  { %v3498_v6 = vmax.f32 %v3492_v14, 0.0 }
 0x208   :  { %v3503_v11 = vpack.c.bf16 %v3497_v43, %v3497_v43 }
 0x209   :  { %v3504_v63 = vpack.c.bf16 %v3498_v6, %v3498_v6 }
 0x20b   :  { %3970 = vmatprep.mubr.bf16.mxu1 %v3504_v63 }
 0x20c   :  { %3971 = vmatmul.mubr.bf16.vlgmr.msra.gmra.mrb[68].mxu1 %v3503_v11 }
 0x20d   :  { %4373 = vmatpush3.bf16.msra.mxu1 %v4997_v2 }
 0x20e   :  { %4374 = vmatprep.subr.bf16.mxu1 %v4998_v26 }
 0x211   :  { %4375 = vmatpush3.bf16.msra.mxu1 %v4999_v46 }
 0x212   :  { %4376 = vmatprep.subr.bf16.mxu1 %v5000_v58 }
 0x215   :  { %4377 = vmatpush3.bf16.msra.mxu1 %v5001_v45  ;;  %v2760_v20 = vpop.f32.mrb[32].mxu0 }
 0x216   :  { %4378 = vmatprep.subr.bf16.mxu1 %v5002_v56  ;;  %v2762_v34 = vpop.f32.mrb[33].mxu0  ;;  %v2899_v23 = vadd.f32 %v6664_v35, %v2760_v20 }
 0x217   :  { %v2764_v36 = vpop.f32.mrb[34].mxu0  ;;  %v2900_v31 = vadd.f32 %v6673_v4, %v2762_v34 }
 0x218   :  { %v2905_v61 = vadd.f32 %v6667_v0, %v2764_v36  ;;  %v2766_v30 = vpop.f32.mrb[35].mxu0 }
 0x219   :  { %4379 = vmatpush3.bf16.msra.mxu1 %v5003_v13  ;;  %v2906_v15 = vadd.f32 %v6676_v9, %v2766_v30 }
 0x21a   :  { %4380 = vmatprep.subr.bf16.mxu1 %v5004_v19  ;;  %v3019_v1 = vmax.f32 %v2899_v23, %v2905_v61 }
 0x21b   :  { %v3026_v12 = vmax.f32 %v2900_v31, %v2906_v15 }
 0x21c   :  { %v3020_v29 = vrot.slane %v3019_v1, 4 }
 0x21d   :  { %4381 = vmatpush3.bf16.msra.mxu1 %v5005_v44  ;;  %v3027_v10 = vrot.slane %v3026_v12, 4  ;;  %v2770_v18 = vpop.f32.mrb[36].mxu0 }
 0x21e   :  { %4382 = vmatprep.subr.bf16.mxu1 %v5006_v50  ;;  %v3021_v42 = vmax.f32 %v3019_v1, %v3020_v29  ;;  %v2772_v17 = vpop.f32.mrb[37].mxu0  ;;  %v2911_v54 = vadd.f32 %v6664_v35, %v2770_v18 }
 0x21f   :  { %v3028_v62 = vmax.f32 %v3026_v12, %v3027_v10  ;;  %v2774_v24 = vpop.f32.mrb[38].mxu0  ;;  %v2912_v40 = vadd.f32 %v6673_v4, %v2772_v17 }
 0x220   :  { %v2917_v52 = vadd.f32 %v6667_v0, %v2774_v24  ;;  %v2776_v55 = vpop.f32.mrb[39].mxu0  ;;  %v3022_v59 = vrot.slane %v3021_v42, 2 }
 0x221   :  { %4383 = vmatpush3.bf16.msra.mxu1 %v5007_v27  ;;  %v2918_v51 = vadd.f32 %v6676_v9, %v2776_v55  ;;  %v3029_v32 = vrot.slane %v3028_v62, 2 }
 0x222   :  { %4384 = vmatprep.subr.bf16.mxu1 %v5008_v53  ;;  %v3061_v25 = vmax.f32 %v2911_v54, %v2917_v52  ;;  %v3023_v8 = vmax.f32 %v3021_v42, %v3022_v59 }
 0x223   :  { %v3068_v48 = vmax.f32 %v2912_v40, %v2918_v51  ;;  %v3030_v41 = vmax.f32 %v3028_v62, %v3029_v32 }
 0x224   :  { %v3062_v16 = vrot.slane %v3061_v25, 4  ;;  %v3024_v5 = vrot.slane %v3023_v8, 1 }
 0x225   :  { %4385 = vmatpush3.bf16.msra.mxu1 %v5009_v33  ;;  %v3069_v57 = vrot.slane %v3068_v48, 4  ;;  %v2780_v7 = vpop.f32.mrb[40].mxu0  ;;  %v3031_v45 = vrot.slane %v3030_v41, 1 }
 0x226   :  { %4386 = vmatprep.subr.bf16.mxu1 %v5010_v49  ;;  %v3063_v28 = vmax.f32 %v3061_v25, %v3062_v16  ;;  %v2782_v21 = vpop.f32.mrb[41].mxu0  ;;  %v2923_v63 = vadd.f32 %v6664_v35, %v2780_v7  ;;  %v3025_v61 = vmax.f32 %v3023_v8, %v3024_v5 }
 0x227   :  { %v3070_v14 = vmax.f32 %v3068_v48, %v3069_v57  ;;  %v2784_v43 = vpop.f32.mrb[42].mxu0  ;;  %v2924_v46 = vadd.f32 %v6673_v4, %v2782_v21  ;;  %v3032_v15 = vmax.f32 %v3030_v41, %v3031_v45 }
 0x228   :  { %v3064_v6 = vrot.slane %v3063_v28, 2  ;;  %v2929_v2 = vadd.f32 %v6667_v0, %v2784_v43  ;;  %v2786_v11 = vpop.f32.mrb[43].mxu0 }
 0x229   :  { %4387 = vmatpush3.bf16.msra.mxu1 %v5011_v37  ;;  %v3071_v26 = vrot.slane %v3070_v14, 2  ;;  %v2930_v58 = vadd.f32 %v6676_v9, %v2786_v11 }
 0x22a   :  { %v3065_v39 = vmax.f32 %v3063_v28, %v3064_v6  ;;  %v3103_v47 = vmax.f32 %v2923_v63, %v2929_v2 }
 0x22b   :  { %v3072_v56 = vmax.f32 %v3070_v14, %v3071_v26  ;;  %v3110_v13 = vmax.f32 %v2924_v46, %v2930_v58 }
 0x22c   :  { %v3066_v20 = vrot.slane %v3065_v39, 1  ;;  %v3104_v19 = vrot.slane %v3103_v47, 4 }
 0x22d   :  { %v3073_v34 = vrot.slane %v3072_v56, 1  ;;  %v3111_v36 = vrot.slane %v3110_v13, 4  ;;  %v2790_v23 = vpop.f32.mrb[44].mxu0 }
 0x22e   :  { %v3067_v30 = vmax.f32 %v3065_v39, %v3066_v20  ;;  %v3105_v44 = vmax.f32 %v3103_v47, %v3104_v19  ;;  %v2792_v31 = vpop.f32.mrb[45].mxu0  ;;  %v2935_v10 = vadd.f32 %v6664_v35, %v2790_v23 }
 0x22f   :  { %v3074_v50 = vmax.f32 %v3072_v56, %v3073_v34  ;;  %v3112_v1 = vmax.f32 %v3110_v13, %v3111_v36  ;;  %v2794_v12 = vpop.f32.mrb[46].mxu0  ;;  %v2936_v62 = vadd.f32 %v6673_v4, %v2792_v31 }
 0x230   :  { %v3416_v29 = vsel %vm3381_vm8, %v3067_v30, %v3025_v61  ;;  %v3106_v27 = vrot.slane %v3105_v44, 2  ;;  %v2941_v18 = vadd.f32 %v6667_v0, %v2794_v12  ;;  %v2796_v53 = vpop.f32.mrb[47].mxu0 }
 0x231   :  { %v3423_v42 = vsel %vm3381_vm8, %v3074_v50, %v3032_v15  ;;  %v3113_v17 = vrot.slane %v3112_v1, 2  ;;  %v2942_v24 = vadd.f32 %v6676_v9, %v2796_v53 }
 0x232   :  { %v3107_v54 = vmax.f32 %v3105_v44, %v3106_v27  ;;  %v3145_v52 = vmax.f32 %v2935_v10, %v2941_v18 }
 0x233   :  { %v3114_v55 = vmax.f32 %v3112_v1, %v3113_v17  ;;  %v3152_v33 = vmax.f32 %v2936_v62, %v2942_v24 }
 0x234   :  { %v3108_v40 = vrot.slane %v3107_v54, 1  ;;  %v3146_v51 = vrot.slane %v3145_v52, 4 }
 0x235   :  { %v3115_v49 = vrot.slane %v3114_v55, 1  ;;  %v3153_v59 = vrot.slane %v3152_v33, 4  ;;  %v2800_v25 = vpop.f32.mrb[48].mxu0 }
 0x236   :  { %v3109_v32 = vmax.f32 %v3107_v54, %v3108_v40  ;;  %v3147_v48 = vmax.f32 %v3145_v52, %v3146_v51  ;;  %v2802_v16 = vpop.f32.mrb[49].mxu0  ;;  %v2947_v21 = vadd.f32 %v6664_v35, %v2800_v25 }
 0x237   :  { %v3116_v37 = vmax.f32 %v3114_v55, %v3115_v49  ;;  %v3154_v57 = vmax.f32 %v3152_v33, %v3153_v59  ;;  %v2804_v7 = vpop.f32.mrb[50].mxu0  ;;  %v2948_v63 = vadd.f32 %v6673_v4, %v2802_v16 }
 0x238   :  { %v3417_v8 = vsel %vm3383_vm9, %v3109_v32, %v3416_v29  ;;  %v3148_v28 = vrot.slane %v3147_v48, 2  ;;  %v2953_v41 = vadd.f32 %v6667_v0, %v2804_v7  ;;  %v2806_v14 = vpop.f32.mrb[51].mxu0 }
 0x239   :  { %v3424_v43 = vsel %vm3383_vm9, %v3116_v37, %v3423_v42  ;;  %v3155_v6 = vrot.slane %v3154_v57, 2  ;;  %v2954_v2 = vadd.f32 %v6676_v9, %v2806_v14 }
 0x23a   :  { %v3149_v11 = vmax.f32 %v3147_v48, %v3148_v28  ;;  %v3187_v26 = vmax.f32 %v2947_v21, %v2953_v41 }
 0x23b   :  { %v3156_v46 = vmax.f32 %v3154_v57, %v3155_v6  ;;  %v3194_v58 = vmax.f32 %v2948_v63, %v2954_v2 }
 0x23c   :  { %v3150_v5 = vrot.slane %v3149_v11, 1  ;;  %v3188_v39 = vrot.slane %v3187_v26, 4 }
 0x23d   :  { %v3157_v47 = vrot.slane %v3156_v46, 1  ;;  %v3195_v45 = vrot.slane %v3194_v58, 4  ;;  %v2810_v56 = vpop.f32.mrb[52].mxu0 }
 0x23e   :  { %v3151_v13 = vmax.f32 %v3149_v11, %v3150_v5  ;;  %v3189_v20 = vmax.f32 %v3187_v26, %v3188_v39  ;;  %v2812_v19 = vpop.f32.mrb[53].mxu0  ;;  %v2959_v44 = vadd.f32 %v6664_v35, %v2810_v56 }
 0x23f   :  { %v3158_v34 = vmax.f32 %v3156_v46, %v3157_v47  ;;  %v3196_v36 = vmax.f32 %v3194_v58, %v3195_v45  ;;  %v2814_v23 = vpop.f32.mrb[54].mxu0  ;;  %v2960_v12 = vadd.f32 %v6673_v4, %v2812_v19 }
 0x240   :  { %v3418_v61 = vsel %vm3385_vm10, %v3151_v13, %v3417_v8  ;;  %v3190_v30 = vrot.slane %v3189_v20, 2  ;;  %v2965_v31 = vadd.f32 %v6667_v0, %v2814_v23  ;;  %v2816_v15 = vpop.f32.mrb[55].mxu0 }
 0x241   :  { %v3425_v50 = vsel %vm3385_vm10, %v3158_v34, %v3424_v43  ;;  %v3197_v1 = vrot.slane %v3196_v36, 2  ;;  %v2966_v29 = vadd.f32 %v6676_v9, %v2816_v15 }
 0x242   :  { %v3191_v27 = vmax.f32 %v3189_v20, %v3190_v30  ;;  %v3229_v10 = vmax.f32 %v2959_v44, %v2965_v31 }
 0x243   :  { %v3198_v18 = vmax.f32 %v3196_v36, %v3197_v1  ;;  %v3236_v53 = vmax.f32 %v2960_v12, %v2966_v29 }
 0x244   :  { %v3192_v42 = vrot.slane %v3191_v27, 1  ;;  %v3230_v17 = vrot.slane %v3229_v10, 4 }
 0x245   :  { %v3199_v62 = vrot.slane %v3198_v18, 1  ;;  %v3237_v24 = vrot.slane %v3236_v53, 4  ;;  %v2820_v54 = vpop.f32.mrb[56].mxu0 }
 0x246   :  { %v3193_v52 = vmax.f32 %v3191_v27, %v3192_v42  ;;  %v3231_v55 = vmax.f32 %v3229_v10, %v3230_v17  ;;  %v2822_v33 = vpop.f32.mrb[57].mxu0  ;;  %v2971_v32 = vadd.f32 %v6664_v35, %v2820_v54 }
 0x247   :  { %v3200_v40 = vmax.f32 %v3198_v18, %v3199_v62  ;;  %v3238_v51 = vmax.f32 %v3236_v53, %v3237_v24  ;;  %v2824_v49 = vpop.f32.mrb[58].mxu0  ;;  %v2972_v7 = vadd.f32 %v6673_v4, %v2822_v33  ;;  %v3482_v33 = vrot.slane %v6495_v3, %v2869_v22 }
 0x248   :  { %v3419_v59 = vsel %vm3387_vm11, %v3193_v52, %v3418_v61  ;;  %v3232_v25 = vrot.slane %v3231_v55, 2  ;;  %v2977_v48 = vadd.f32 %v6667_v0, %v2824_v49  ;;  %v2826_v16 = vpop.f32.mrb[59].mxu0 }
 0x249   :  { %v3426_v37 = vsel %vm3387_vm11, %v3200_v40, %v3425_v50  ;;  %v3239_v57 = vrot.slane %v3238_v51, 2  ;;  %v2978_v8 = vadd.f32 %v6676_v9, %v2826_v16 }
 0x24a   :  { %v3233_v28 = vmax.f32 %v3231_v55, %v3232_v25  ;;  %v3271_v21 = vmax.f32 %v2971_v32, %v2977_v48  ;;  %v3478_v55 = vrot.slane %v6495_v3, %v2865_v60  ;;  %v4279_v3 = vld [vmem:[%s6762_s5] ss:$0 sm:$0xff] }
 0x24b   :  { %v3240_v41 = vmax.f32 %v3238_v51, %v3239_v57  ;;  %v3278_v14 = vmax.f32 %v2972_v7, %v2978_v8 }
 0x24c   :  { %v3234_v43 = vrot.slane %v3233_v28, 1  ;;  %v3272_v6 = vrot.slane %v3271_v21, 4 }
 0x24d   :  { %v3241_v63 = vrot.slane %v3240_v41, 1  ;;  %v3279_v2 = vrot.slane %v3278_v14, 4  ;;  %v2830_v11 = vpop.f32.mrb[60].mxu0 }
 0x24e   :  { %v3235_v26 = vmax.f32 %v3233_v28, %v3234_v43  ;;  %v3273_v46 = vmax.f32 %v3271_v21, %v3272_v6  ;;  %v2832_v58 = vpop.f32.mrb[61].mxu0  ;;  %v2983_v13 = vadd.f32 %v6664_v35, %v2830_v11 }
 0x24f   :  { %v3242_v5 = vmax.f32 %v3240_v41, %v3241_v63  ;;  %v3280_v39 = vmax.f32 %v3278_v14, %v3279_v2  ;;  %v2834_v47 = vpop.f32.mrb[62].mxu0  ;;  %v2984_v36 = vadd.f32 %v6673_v4, %v2832_v58 }
 0x250   :  { %v3420_v45 = vsel %vm3389_vm12, %v3235_v26, %v3419_v59  ;;  %v3274_v56 = vrot.slane %v3273_v46, 2  ;;  %v2989_v20 = vadd.f32 %v6667_v0, %v2834_v47  ;;  %v2836_v19 = vpop.f32.mrb[63].mxu0 }
 0x251   :  { %v3281_v34 = vrot.slane %v3280_v39, 2  ;;  %v2990_v23 = vadd.f32 %v6676_v9, %v2836_v19  ;;  %v3427_v61 = vsel %vm3389_vm12, %v3242_v5, %v3426_v37 }
 0x252   :  { %v3275_v30 = vmax.f32 %v3273_v46, %v3274_v56  ;;  %v3313_v44 = vmax.f32 %v2983_v13, %v2989_v20 }
 0x253   :  { %v3282_v31 = vmax.f32 %v3280_v39, %v3281_v34  ;;  %v3320_v15 = vmax.f32 %v2984_v36, %v2990_v23 }
 0x254   :  { %v3276_v50 = vrot.slane %v3275_v30, 1  ;;  %v3314_v1 = vrot.slane %v3313_v44, 4 }
 0x255   :  { %v3283_v12 = vrot.slane %v3282_v31, 1  ;;  %v3321_v29 = vrot.slane %v3320_v15, 4 }
 0x256   :  { %v3277_v27 = vmax.f32 %v3275_v30, %v3276_v50  ;;  %v3315_v35 = vmax.f32 %v3313_v44, %v3314_v1 }
 0x257   :  { %v3284_v10 = vmax.f32 %v3282_v31, %v3283_v12  ;;  %v3322_v0 = vmax.f32 %v3320_v15, %v3321_v29 }
 0x258   :  { %v3316_v18 = vrot.slane %v3315_v35, 2  ;;  %v3421_v53 = vsel %vm3391_vm13, %v3277_v27, %v3420_v45 }
 0x259   :  { %v3323_v4 = vrot.slane %v3322_v0, 2  ;;  %v3428_v9 = vsel %vm3391_vm13, %v3284_v10, %v3427_v61 }
 0x25a   :  { %v3317_v42 = vmax.f32 %v3315_v35, %v3316_v18 }
 0x25b   :  { %v3324_v17 = vmax.f32 %v3322_v0, %v3323_v4 }
 0x25c   :  { %v3318_v62 = vrot.slane %v3317_v42, 1 }
 0x25d   :  { %v3325_v24 = vrot.slane %v3324_v17, 1 }
 0x25e   :  { %v3319_v54 = vmax.f32 %v3317_v42, %v3318_v62 }
 0x25f   :  { %v3326_v52 = vmax.f32 %v3324_v17, %v3325_v24 }
 0x260   :  { %v3422_v40 = vsel %vm3393_vm14, %v3319_v54, %v3421_v53 }
 0x261   :  { %v3429_v51 = vsel %vm3393_vm14, %v3326_v52, %v3428_v9  ;;  %v3440_v49 = vmax.f32 %v3422_v40, -1e+30 }
 0x262   :  { %v3441_v59 = vmax.f32 %v3429_v51, -1e+30 }
 0x263   :  { %v3493_v25 = vadd.f32 %v3478_v55, %v3440_v49 }
 0x264   :  { %v3494_v32 = vadd.f32 %v3482_v33, %v3441_v59 }
 0x265   :  { %v3499_v48 = vmax.f32 %v3493_v25, 0.0 }
 0x266   :  { %v3500_v16 = vmax.f32 %v3494_v32, 0.0 }
 0x267   :  { %v3505_v57 = vpack.c.bf16 %v3499_v48, %v3499_v48 }
 0x268   :  { %v3506_v37 = vpack.c.bf16 %v3500_v16, %v3500_v16 }
 0x26a   :  { %4010 = vmatprep.mubr.bf16.mxu1 %v3506_v37 }
 0x26b   :  { %4011 = vmatmul.mubr.bf16.vlgmr.msra.gmra.mrb[72].mxu1 %v3505_v57 }
 0x280   :  { %v4344_v7 = vpop.f32.mrb[64].mxu1 }
 0x281   :  { %v4345_v60 = vpop.f32.mrb[65].mxu1 }
 0x282   :  { %v4346_v8 = vadd.f32 %v4345_v60, %v4344_v7  ;;  %v4347_v38 = vpop.f32.mrb[66].mxu1 }
 0x283   :  { %v4348_v28 = vpop.f32.mrb[67].mxu1 }
 0x284   :  { %v3933_v41 = vadd.f32 %v4346_v8, %v4279_v3 }
 0x2df   :  { %v4366_v22 = vpop.f32.mrb[68].mxu1 }
 0x2e0   :  { %v4367_v21 = vpop.f32.mrb[69].mxu1 }
 0x2e1   :  { %v4368_v14 = vadd.f32 %v4367_v21, %v4366_v22  ;;  %v4369_v43 = vpop.f32.mrb[70].mxu1 }
 0x2e2   :  { %v4370_v6 = vpop.f32.mrb[71].mxu1 }
 0x2e3   :  { %v3973_v63 = vadd.f32 %v4368_v14, %v3933_v41 }
 0x33e   :  { %v4388_v2 = vpop.f32.mrb[72].mxu1 }
 0x33f   :  { %v4389_v11 = vpop.f32.mrb[73].mxu1 }
 0x340   :  { %v4390_v26 = vadd.f32 %v4389_v11, %v4388_v2  ;;  %v4391_v46 = vpop.f32.mrb[74].mxu1 }
 0x341   :  { %v4392_v58 = vpop.f32.mrb[75].mxu1 }
 0x342   :  { %v4013_v5 = vadd.f32 %v4390_v26, %v3973_v63 }
 0x344   :  { %4018 = vst [vmem:[%s6763_s6] sm:$0xff] %v4013_v5 }

</bundles_post_ra>
